<compile_context>
chip_gen: v6e
topology: v6e:2x2x1
jax: 0.10.0
libtpu: 0.0.40
codegen_flags: <defaults>
</compile_context>

<pallas_src>
import functools

import jax
import jax.numpy as jnp
from jax.experimental import pallas as pl
from jax.experimental.pallas import tpu as pltpu

# Module hyper-parameters (defaults of MHSA_block).
D_MODEL = 64
DF_QK = 16
DF_V = 16
H_QK = 4
H_V = 4
SCALE = float(DF_QK) ** 0.5  # torch.tensor(16) ** 0.5 == 4.0

# TODO(synk): Dropout (p=0.0), the optional additive `attn_` bias (defaults to 0.0) and
#             the return_attn path are identities / unused defaults and are not emitted.


def _mhsa_kernel(x_ref, w_ref, o_ref, *, seq, n_head, q_blk, d_model):
    """One grid step == BT batch elements == BT*seq rows of x.

    x_ref : (BT*seq, D) bf16   rows flattened over (batch, position)
    w_ref : (D, n_head*q_blk + n_head*D + q_blk) bf16 fused weight, column regions
            [ talking-heads-mixed & scaled Q | per-head (V @ Wproj) | K ]
            (all three regions start on 128-lane boundaries)
    o_ref : (BT*seq, D) bf16   natural-layout output rows
    """
    rows = x_ref.shape[0]
    bt = rows // seq
    q_cols = n_head * q_blk            # 256
    vp_off = q_cols                    # 256
    k_off = q_cols + n_head * d_model  # 512

    # Single fused, lane-dense projection on the MXU (bf16 in, f32 accumulate),
    # then ONE cast of the whole qkv to bf16 (no per-head casts later).
    qkv = jnp.dot(x_ref[...], w_ref[...],
                  preferred_element_type=jnp.float32).astype(jnp.bfloat16)

    k = qkv[:, k_off:k_off + q_blk].reshape(bt, seq, q_blk)              # (BT, P, 64)

    # Stack the per-head 64-wide blocks along the sublane axis so attention runs as
    # ONE batched logits matmul and ONE batched value matmul (row m = o*P + p).
    q_stack = jnp.concatenate(
        [qkv[:, o * q_blk:(o + 1) * q_blk].reshape(bt, seq, q_blk)
         for o in range(n_head)], axis=1)                                # (BT, H*P, 64)
    vp_stack = jnp.concatenate(
        [qkv[:, vp_off + o * d_model:vp_off + (o + 1) * d_model].reshape(bt, seq, d_model)
         for o in range(n_head)], axis=1)                                # (BT, H*P, 64)

    # All-head logits in one batched matmul; talking-heads mix and 1/sqrt(d_qk) are
    # already folded into the query weights.
    logits = jnp.einsum('bmd,bqd->bmq', q_stack, k,
                        preferred_element_type=jnp.float32)              # (BT, H*P, P)

    # Single softmax over keys in f32; the divide runs on the EUP.
    mx = jnp.max(logits, axis=-1, keepdims=True)
    e = jnp.exp(logits - mx)
    attn = e * pl.reciprocal(jnp.sum(e, axis=-1, keepdims=True), approx=True)

    # Regroup heads onto the lane/contraction axis: attn_flat[b, p, o*P+q].
    attn_flat = jnp.concatenate(
        [attn[:, o * seq:(o + 1) * seq, :] for o in range(n_head)],
        axis=-1).astype(jnp.bfloat16)                                    # (BT, P, H*P)

    # One batched value matmul with K = H*P; output projection already folded in.
    out = jnp.einsum('bpk,bkd->bpd', attn_flat, vp_stack,
                     preferred_element_type=jnp.float32)                 # (BT, P, D)

    # Natural-layout bf16 writeback (no sublane->lane slab rebuild).
    o_ref[...] = out.reshape(rows, d_model).astype(o_ref.dtype)


def _fold_weights(wq, wk, wv, wt, wp, dtype):
    """Fuse all five weights into one (D, H*64 + H*D + 64) matrix, regions 128-aligned.

    Column order: [Q_talk (H_QK * H_QK*DF_QK) | VP (H_V * D) | K (H_QK*DF_QK)].
    Mathematically identical to the module's forward.
    """
    d_model = wq.shape[0]
    wq_h = wq.reshape(d_model, H_QK, DF_QK)
    wq_talk = wq_h[:, None, :, :] * (wt / SCALE)[None, :, :, None]       # (D, o, h, d)
    wq_talk = wq_talk.reshape(d_model, H_QK * H_QK * DF_QK)              # (D, 256)
    wv_h = wv.reshape(d_model, H_V, DF_V)
    wp_h = wp.reshape(H_V, DF_V, d_model)
    wvp = jnp.einsum('xhd,hdy->xhy', wv_h, wp_h).reshape(d_model, H_V * d_model)  # (D,256)
    return jnp.concatenate([wq_talk, wvp, wk], axis=1).astype(dtype)     # (D, 576)


def _pick_block_b(batch, seq):
    """Batch elements per grid step.

    Targets ~2048 rows per step (few, fat steps for single-TC chips); only splits
    into an even number of steps when each step still gets >=1024 rows (so a v7x
    megacore can use both TensorCores without starving v5e/v6e of step size).
    """
    def aligned(bt):
        return bt >= batch or (bt * seq) % 8 == 0

    target_rows = 2048
    bt = max(1, min(batch, target_rows // max(seq, 1)))
    while bt > 1 and not aligned(bt):
        bt -= 1

    steps = pl.cdiv(batch, bt)
    if steps == 1 and batch > 1:
        half = batch // 2
        while half > 1 and not aligned(half):
            half -= 1
        if aligned(half) and half * seq >= 1024:
            bt = half
    elif steps > 1 and steps % 2 == 1:
        cand = pl.cdiv(batch, steps + 1)
        while cand > 1 and not aligned(cand):
            cand -= 1
        if aligned(cand) and cand * seq >= 1024:
            bt = cand
    return bt


def mhsa_forward(x, wq, wk, wv, wt, wp, *, block_b=None,
                 compute_dtype=jnp.bfloat16, out_dtype=jnp.bfloat16):
    B, P, D = x.shape
    assert D == D_MODEL
    assert wq.shape == (D, H_QK * DF_QK) and wk.shape == (D, H_QK * DF_QK)
    assert wv.shape == (D, H_V * DF_V) and wp.shape == (H_V * DF_V, D)
    assert wt.shape == (H_QK, H_QK) and H_QK == H_V

    w = _fold_weights(wq, wk, wv, wt, wp, compute_dtype)      # (64, 576) for defaults
    w_cols = w.shape[1]
    q_blk = H_QK * DF_QK                                       # 64

    bt = block_b if block_b is not None else _pick_block_b(B, P)
    grid = (pl.cdiv(B, bt),)

    # bf16 at the kernel boundary (halves the x DMA, doubles MXU rate); rows are
    # pre-flattened to (B*P, D) so the fused projection needs no in-kernel reshape.
    x_flat = x.astype(compute_dtype).reshape(B * P, D)

    kernel = functools.partial(_mhsa_kernel, seq=P, n_head=H_QK, q_blk=q_blk, d_model=D)

    out = pl.pallas_call(
        kernel,
        out_shape=jax.ShapeDtypeStruct((B * P, D), out_dtype),
        grid_spec=pltpu.PrefetchScalarGridSpec(
            num_scalar_prefetch=0,
            grid=grid,
            in_specs=[
                pl.BlockSpec((bt * P, D), lambda i: (i, 0)),       # x rows
                pl.BlockSpec((D, w_cols), lambda i: (0, 0)),       # fused weights (resident)
            ],
            out_specs=pl.BlockSpec((bt * P, D), lambda i: (i, 0)),  # natural-layout rows
        ),
        compiler_params=pltpu.CompilerParams(
            dimension_semantics=("parallel",),
            vmem_limit_bytes=32 * 1024 * 1024,
        ),
    )(x_flat, w)
    return out.reshape(B, P, D)


def mhsa_reference(x, wq, wk, wv, wt, wp):
    """Pure-JAX f32 replica of the PyTorch forward (correctness oracle)."""
    B, P, D = x.shape
    q = (x @ wq).reshape(B, P, H_QK, DF_QK).transpose(0, 2, 1, 3) / SCALE
    k = (x @ wk).reshape(B, P, H_QK, DF_QK).transpose(0, 2, 1, 3)
    v = (x @ wv).reshape(B, P, H_V, DF_V).transpose(0, 2, 1, 3)
    attn = q @ jnp.swapaxes(k, -1, -2)
    attn = jnp.einsum('oh,bhij->boij', wt, attn)       # talking heads (1x1 conv)
    attn = jax.nn.softmax(attn, axis=-1)
    out = (attn @ v).transpose(0, 2, 1, 3).reshape(B, P, H_V * DF_V)
    return out @ wp


if __name__ == "__main__":
    B, P, D = 16, 8, D_MODEL

    key = jax.random.PRNGKey(0)
    kx, kq, kk, kv, kt, kp = jax.random.split(key, 6)
    x = jax.random.normal(kx, (B, P, D), dtype=jnp.float32)
    wq = jax.random.normal(kq, (D, H_QK * DF_QK), dtype=jnp.float32) * 0.05
    wk = jax.random.normal(kk, (D, H_QK * DF_QK), dtype=jnp.float32) * 0.05
    wv = jax.random.normal(kv, (D, H_V * DF_V), dtype=jnp.float32) * 0.05
    wt = jax.random.normal(kt, (H_QK, H_QK), dtype=jnp.float32) * 0.25
    wp = jax.random.normal(kp, (H_V * DF_V, D), dtype=jnp.float32) * 0.05

    y_ref = mhsa_reference(x, wq, wk, wv, wt, wp)

    # Default blocking (single fat grid step for this small demo).
    y = jax.jit(mhsa_forward)(x, wq, wk, wv, wt, wp)
    y = jax.block_until_ready(y)
    assert y.shape == (B, P, D)
    err = float(jnp.max(jnp.abs(y.astype(jnp.float32) - y_ref)))
    assert jnp.allclose(y.astype(jnp.float32), y_ref, atol=2e-2, rtol=2e-2), (
        f"mismatch vs reference (max abs err {err:.3e})")

    # Also exercise the multi-step grid path (2 grid steps of 8 batch elements).
    y2 = jax.jit(mhsa_forward, static_argnames=("block_b",))(
        x, wq, wk, wv, wt, wp, block_b=8)
    y2 = jax.block_until_ready(y2)
    err2 = float(jnp.max(jnp.abs(y2.astype(jnp.float32) - y_ref)))
    assert jnp.allclose(y2.astype(jnp.float32), y_ref, atol=2e-2, rtol=2e-2), (
        f"multi-step mismatch vs reference (max abs err {err2:.3e})")

    print("KERNEL_OK")
</pallas_src>

<mosaic_0001>
module attributes {stable_mosaic.version = 11 : i64} {
  func.func @_mhsa_kernel(%arg0: i32, %arg1: memref<128x64xbf16, #tpu.memory_space<vmem>>, %arg2: memref<64x576xbf16, #tpu.memory_space<vmem>>, %arg3: memref<128x64xbf16, #tpu.memory_space<vmem>>) attributes {dimension_semantics = [#tpu.dimension_semantics<parallel>], iteration_bounds = array<i64: 1>, scalar_prefetch = 0 : i64, scratch_operands = 0 : i64, tpu.core_type = #tpu.core_type<tc>, window_params = [{transform_indices = @transform_0, window_bounds = array<i64: 128, 64>}, {pipeline_mode = #tpu.pipeline_mode<synchronous>, transform_indices = @transform_1, window_bounds = array<i64: 64, 576>}, {transform_indices = @transform_2, window_bounds = array<i64: 128, 64>}]} {
    %c0 = arith.constant 0 : index
    %c0_0 = arith.constant 0 : index
    %0 = vector.load %arg1[%c0, %c0_0] : memref<128x64xbf16, #tpu.memory_space<vmem>>, vector<128x64xbf16>
    %c0_1 = arith.constant 0 : index
    %c0_2 = arith.constant 0 : index
    %1 = vector.load %arg2[%c0_1, %c0_2] : memref<64x576xbf16, #tpu.memory_space<vmem>>, vector<64x576xbf16>
    %cst = arith.constant dense<0.000000e+00> : vector<128x576xf32>
    %2 = tpu.matmul %0, %1, %cst {dimension_numbers = #tpu.dot_dimension_numbers<[1], [0], [0], [1], [0, 0, 1, 1], [], []>} : vector<128x64xbf16>, vector<64x576xbf16>, vector<128x576xf32> -> vector<128x576xf32>
    %3 = arith.truncf %2 : vector<128x576xf32> to vector<128x576xbf16>
    %4 = vector.extract_strided_slice %3 {offsets = [0, 512], sizes = [128, 64], strides = [1, 1]} : vector<128x576xbf16> to vector<128x64xbf16>
    %5 = vector.shape_cast %4 : vector<128x64xbf16> to vector<16x8x64xbf16>
    %6 = vector.extract_strided_slice %3 {offsets = [0, 0], sizes = [128, 64], strides = [1, 1]} : vector<128x576xbf16> to vector<128x64xbf16>
    %7 = vector.shape_cast %6 : vector<128x64xbf16> to vector<16x8x64xbf16>
    %8 = vector.extract_strided_slice %3 {offsets = [0, 64], sizes = [128, 64], strides = [1, 1]} : vector<128x576xbf16> to vector<128x64xbf16>
    %9 = vector.shape_cast %8 : vector<128x64xbf16> to vector<16x8x64xbf16>
    %10 = vector.extract_strided_slice %3 {offsets = [0, 128], sizes = [128, 64], strides = [1, 1]} : vector<128x576xbf16> to vector<128x64xbf16>
    %11 = vector.shape_cast %10 : vector<128x64xbf16> to vector<16x8x64xbf16>
    %12 = vector.extract_strided_slice %3 {offsets = [0, 192], sizes = [128, 64], strides = [1, 1]} : vector<128x576xbf16> to vector<128x64xbf16>
    %13 = vector.shape_cast %12 : vector<128x64xbf16> to vector<16x8x64xbf16>
    %14 = tpu.concatenate %7, %9, %11, %13 in 1 : vector<16x8x64xbf16>, vector<16x8x64xbf16>, vector<16x8x64xbf16>, vector<16x8x64xbf16> -> vector<16x32x64xbf16>
    %15 = vector.extract_strided_slice %3 {offsets = [0, 256], sizes = [128, 64], strides = [1, 1]} : vector<128x576xbf16> to vector<128x64xbf16>
    %16 = vector.shape_cast %15 : vector<128x64xbf16> to vector<16x8x64xbf16>
    %17 = vector.extract_strided_slice %3 {offsets = [0, 320], sizes = [128, 64], strides = [1, 1]} : vector<128x576xbf16> to vector<128x64xbf16>
    %18 = vector.shape_cast %17 : vector<128x64xbf16> to vector<16x8x64xbf16>
    %19 = vector.extract_strided_slice %3 {offsets = [0, 384], sizes = [128, 64], strides = [1, 1]} : vector<128x576xbf16> to vector<128x64xbf16>
    %20 = vector.shape_cast %19 : vector<128x64xbf16> to vector<16x8x64xbf16>
    %21 = vector.extract_strided_slice %3 {offsets = [0, 448], sizes = [128, 64], strides = [1, 1]} : vector<128x576xbf16> to vector<128x64xbf16>
    %22 = vector.shape_cast %21 : vector<128x64xbf16> to vector<16x8x64xbf16>
    %23 = tpu.concatenate %16, %18, %20, %22 in 1 : vector<16x8x64xbf16>, vector<16x8x64xbf16>, vector<16x8x64xbf16>, vector<16x8x64xbf16> -> vector<16x32x64xbf16>
    "tpu.trace_start"() <{level = 10 : i32, message = "bmd,bqd->bmq"}> : () -> ()
    %cst_3 = arith.constant dense<0.000000e+00> : vector<16x32x8xf32>
    %24 = tpu.matmul %14, %5, %cst_3 {dimension_numbers = #tpu.dot_dimension_numbers<[2], [2], [1], [1], [0, 0, 0, 1, 1, 1], [0], [0]>} : vector<16x32x64xbf16>, vector<16x8x64xbf16>, vector<16x32x8xf32> -> vector<16x32x8xf32>
    "tpu.trace_stop"() : () -> ()
    %cst_4 = arith.constant dense<0xFF800000> : vector<16x32xf32>
    %25 = vector.multi_reduction <maximumf>, %24, %cst_4 [2] : vector<16x32x8xf32> to vector<16x32xf32>
    %26 = vector.shape_cast %25 : vector<16x32xf32> to vector<16x32x1xf32>
    %27 = vector.broadcast %26 : vector<16x32x1xf32> to vector<16x32x8xf32>
    %28 = arith.subf %24, %27 : vector<16x32x8xf32>
    %29 = math.exp %28 : vector<16x32x8xf32>
    %cst_5 = arith.constant dense<0.000000e+00> : vector<16x32xf32>
    %30 = vector.multi_reduction <add>, %29, %cst_5 [2] : vector<16x32x8xf32> to vector<16x32xf32>
    %31 = vector.shape_cast %30 : vector<16x32xf32> to vector<16x32x1xf32>
    %32 = tpu.reciprocal %31 {approx = true} : vector<16x32x1xf32> -> vector<16x32x1xf32>
    %33 = vector.broadcast %32 : vector<16x32x1xf32> to vector<16x32x8xf32>
    %34 = arith.mulf %29, %33 : vector<16x32x8xf32>
    %35 = vector.extract_strided_slice %34 {offsets = [0, 0, 0], sizes = [16, 8, 8], strides = [1, 1, 1]} : vector<16x32x8xf32> to vector<16x8x8xf32>
    %36 = vector.extract_strided_slice %34 {offsets = [0, 8, 0], sizes = [16, 8, 8], strides = [1, 1, 1]} : vector<16x32x8xf32> to vector<16x8x8xf32>
    %37 = vector.extract_strided_slice %34 {offsets = [0, 16, 0], sizes = [16, 8, 8], strides = [1, 1, 1]} : vector<16x32x8xf32> to vector<16x8x8xf32>
    %38 = vector.extract_strided_slice %34 {offsets = [0, 24, 0], sizes = [16, 8, 8], strides = [1, 1, 1]} : vector<16x32x8xf32> to vector<16x8x8xf32>
    %39 = tpu.concatenate %35, %36, %37, %38 in 2 : vector<16x8x8xf32>, vector<16x8x8xf32>, vector<16x8x8xf32>, vector<16x8x8xf32> -> vector<16x8x32xf32>
    %40 = arith.truncf %39 : vector<16x8x32xf32> to vector<16x8x32xbf16>
    "tpu.trace_start"() <{level = 10 : i32, message = "bpk,bkd->bpd"}> : () -> ()
    %cst_6 = arith.constant dense<0.000000e+00> : vector<16x8x64xf32>
    %41 = tpu.matmul %40, %23, %cst_6 {dimension_numbers = #tpu.dot_dimension_numbers<[2], [1], [1], [2], [0, 0, 0, 1, 1, 2], [0], [0]>} : vector<16x8x32xbf16>, vector<16x32x64xbf16>, vector<16x8x64xf32> -> vector<16x8x64xf32>
    "tpu.trace_stop"() : () -> ()
    %42 = vector.shape_cast %41 : vector<16x8x64xf32> to vector<128x64xf32>
    %43 = arith.truncf %42 : vector<128x64xf32> to vector<128x64xbf16>
    %c0_7 = arith.constant 0 : index
    %c0_8 = arith.constant 0 : index
    %44 = vector.load %arg3[%c0_7, %c0_8] : memref<128x64xbf16, #tpu.memory_space<vmem>>, vector<128x64xbf16>
    tpu.vector_store %arg3[%c0_7, %c0_8], %43 {strides = array<i32>} : memref<128x64xbf16, #tpu.memory_space<vmem>>, vector<128x64xbf16>,
    return
  }
  func.func @transform_0(%arg0: i32) -> (i32, i32) {
    %c0_i32 = arith.constant 0 : i32
    %c0_i32_0 = arith.constant 0 : i32
    return %arg0, %c0_i32 : i32, i32
  }
  func.func @transform_1(%arg0: i32) -> (i32, i32) {
    %c0_i32 = arith.constant 0 : i32
    %c0_i32_0 = arith.constant 0 : i32
    %c0_i32_1 = arith.constant 0 : i32
    return %c0_i32, %c0_i32_0 : i32, i32
  }
  func.func @transform_2(%arg0: i32) -> (i32, i32) {
    %c0_i32 = arith.constant 0 : i32
    %c0_i32_0 = arith.constant 0 : i32
    return %arg0, %c0_i32 : i32, i32
  }
}

</mosaic_0001>

<bundles_post_ra>
// kernel: mhsa_forward.1
= control target key start
LH: loop header
LB: loop body
LE: loop exit
PB: predicated region body
PF: predicated region fallthrough
CT: control target
= control target key end

     0   :  { %v4890_v2 = vmov 0   ;;  %vm197_vm0 = vcmask 523264   ;;  %s6558_s0 = inlined_call_operand.vmem [shape: bf16[128,64], index: 0, kind: input, shape index: {}]   ;;  %s6559_s1 = inlined_call_operand.vmem [shape: bf16[64,576], index: 1, kind: input, shape index: {}]   ;;  %s6560_s2 = inlined_call_operand.hbm [shape: bf16[128,64], index: 2, kind: output, shape index: {}]  }
   0x1   :  { %v4576_v0 = vld [vmem:[%s6559_s1 + $0x7c] ss:$20 sps:$4 sm:$0xff]   ;;  %v4578_v1 = vld [vmem:[%s6559_s1 + $0x78] ss:$20 sps:$4 sm:$0xff]   ;;  %254 = vmatprep.mubr.bf16.mxu0 %v4890_v2  ;;  %367 = vmatprep.mubr.bf16.mxu1 %v4890_v2  ;;  %v4579_v3 = vld [vmem:[%s6559_s1 + $0x54] ss:$20 sps:$4 sm:$0xff]  }
   0x2   :  { %230 = vmatprep.subr.bf16.mxu0 %v4576_v0  ;;  %v4581_v4 = vld [vmem:[%s6559_s1 + $0x50] ss:$20 sps:$4 sm:$0xff]   ;;  %v4582_v5 = vld [vmem:[%s6559_s1 + $0x2c] ss:$20 sps:$4 sm:$0xff]   ;;  %v4584_v6 = vld [vmem:[%s6559_s1 + $0x28] ss:$20 sps:$4 sm:$0xff]  }
   0x3   :  { %231 = vmatpush1.bf16.msra.mxu0 %v4578_v1  ;;  %v4585_v7 = vld [vmem:[%s6559_s1 + $0x4] ss:$20 sps:$4 sm:$0xff]   ;;  %v4587_v8 = vld [vmem:[%s6559_s1] ss:$20 sps:$4 sm:$0xff]   ;;  %v4595_v9 = vld [vmem:[%s6559_s1 + $0x88] ss:$20 sps:$4 sm:$0xff]  }
   0x4   :  { %232 = vmatprep.subr.bf16.mxu0 %v4579_v3  ;;  %v4946_v10 = vld [vmem:[%s6558_s0] sm:$0xff]   ;;  %v4603_v14 = vld [vmem:[%s6559_s1 + $0x5c] ss:$20 sps:$4 sm:$0xff]   ;;  %v4598_v15 = vld [vmem:[%s6559_s1 + $0x38] ss:$20 sps:$4 sm:$0xff]  }
   0x5   :  { %v4596_v11 = vld [vmem:[%s6559_s1 + $0x60] ss:$20 sps:$4 sm:$0xff]   ;;  %v4600_v12 = vld [vmem:[%s6559_s1 + $0x84] ss:$20 sps:$4 sm:$0xff]   ;;  %v4589_v17 = vld [vmem:[%s6558_s0 + $0x8] sm:$0xff]  }
   0x6   :  { %v4602_v13 = vld [vmem:[%s6559_s1 + $0x80] ss:$20 sps:$4 sm:$0xff]   ;;  %343 = vmatprep.subr.bf16.mxu1 %v4600_v12  ;;  %v4605_v16 = vld [vmem:[%s6559_s1 + $0x58] ss:$20 sps:$4 sm:$0xff]  }
   0x7   :  { %233 = vmatpush1.bf16.msra.mxu0 %v4581_v4  ;;  %344 = vmatpush1.bf16.msra.mxu1 %v4602_v13  ;;  %v4606_v18 = vld [vmem:[%s6559_s1 + $0x34] ss:$20 sps:$4 sm:$0xff]  }
   0x8   :  { %234 = vmatprep.subr.bf16.mxu0 %v4582_v5  ;;  %345 = vmatprep.subr.bf16.mxu1 %v4603_v14 }
   0xb   :  { %235 = vmatpush1.bf16.msra.mxu0 %v4584_v6 }
   0xc   :  { %236 = vmatprep.subr.bf16.mxu0 %v4585_v7 }
   0xf   :  { %237 = vmatpush1.bf16.msra.mxu0 %v4587_v8 }
  0x10   :  { %4183 = vmatprep.subr.bf16.mxu0 %v4595_v9 }
  0x12   :  { %3811 = vmatmul.mubr.msk.bf16.vlgmr.msra.gmra.mxu0 %vm197_vm0, %v4946_v10 }
  0x13   :  { %264 = vmatprep.mubr.bf16.mxu0 %v4890_v2  ;;  %4184 = vmatpush3.bf16.msra.mxu0 %v4595_v9 }
  0x14   :  { %4185 = vmatprep.subr.bf16.mxu0 %v4596_v11 }
  0x15   :  { %7 = vsyncpa [#allocation3], 0  ;;  %v4599_v19 = vld [vmem:[%s6559_s1 + $0x10] ss:$20 sps:$4 sm:$0xff]   ;;  %346 = vmatpush1.bf16.msra.mxu1 %v4605_v16  ;;  %v4609_v21 = vld [vmem:[%s6559_s1 + $0xc] ss:$20 sps:$4 sm:$0xff]  }
  0x16   :  { %v4608_v20 = vld [vmem:[%s6559_s1 + $0x30] ss:$20 sps:$4 sm:$0xff]   ;;  %347 = vmatprep.subr.bf16.mxu1 %v4606_v18  ;;  %v4611_v22 = vld [vmem:[%s6559_s1 + $0x8] ss:$20 sps:$4 sm:$0xff]   ;;  %vm769_vm1 = vcmask 1043456   ;;  %vm2034_vm2 = vcmask 64512  }
  0x17   :  { %4186 = vmatpush3.bf16.msra.mxu0 %v4596_v11  ;;  %v4590_v23 = vld [vmem:[%s6558_s0 + $0x10] sm:$0xff]   ;;  %v4591_v24 = vld [vmem:[%s6558_s0 + $0x18] sm:$0xff]   ;;  %v4592_v25 = vld [vmem:[%s6558_s0 + $0x20] sm:$0xff]   ;;  %s4893_s8 = smov 16   ;;  %vm4894_vm3 = vmmov 0   ;;  %s4895_s9 = smov 24  }
  0x18   :  { %4187 = vmatprep.subr.bf16.mxu0 %v4598_v15  ;;  %v4593_v26 = vld [vmem:[%s6558_s0 + $0x28] sm:$0xff]   ;;  %v4594_v27 = vld [vmem:[%s6558_s0 + $0x30] sm:$0xff]   ;;  %v4597_v28 = vld [vmem:[%s6558_s0 + $0x38] sm:$0xff]   ;;  %s4891_s0 = smov 64   ;;  %s4896_s10 = smov 8   ;;  %vm2947_vm4 = vcmask 130048  }
  0x19   :  { %348 = vmatpush1.bf16.msra.mxu1 %v4608_v20  ;;  %vm2964_vm5 = vcmask 195584   ;;  %vm2997_vm6 = vcmask 261120   ;;  %vm3750_vm7 = vcmask 519168   ;;  %s4897_s11 = smov [#allocation2]  }
  0x1a   :  { %3812 = vmatmul.mubr.msk.bf16.gmra.mxu0 %vm197_vm0, %v4589_v17  ;;  %349 = vmatprep.subr.bf16.mxu1 %v4609_v21  ;;  %s3772_s12 = sshll.u32 %s4897_s11, 4  ;;  %s3773_s12 = int_to_ptr.vmem [resolvable:$true] %s3772_s12 }
  0x1b   :  { %274 = vmatprep.mubr.bf16.mxu0 %v4890_v2  ;;  %4188 = vmatpush3.bf16.msra.mxu0 %v4598_v15  ;;  %s4868_s13 = scalar_lea.vmem %s3773_s12, 1024  ;;  %p4873_p1 = scmp.lt.s32.totalorder %s3773_s12, %s3773_s12 }
  0x1c   :  { %4189 = vmatprep.subr.bf16.mxu0 %v4599_v19  ;;  %p4869_p0 = scmp.ne.s32.totalorder %s3773_s12, %s4868_s13  ;;  %p4874_p2 = scmp.lt.s32.totalorder %s4868_s13, %s4868_s13 }
  0x1d   :  { %350 = vmatpush1.bf16.msra.mxu1 %v4611_v22 }
  0x1e   :  { %p4875_p3 = por %p4874_p2, %p4873_p1 }
  0x1f   :  { %4190 = vmatpush3.bf16.msra.mxu0 %v4599_v19 }
  0x20   :  { %3819 = vmatmul.mubr.msk.bf16.vlgmr.msra.gmra.mxu1 %vm197_vm0, %v4946_v10  ;;  %p4876_p4 = pnand %p4875_p3, %p4869_p0 }
  0x21   :  { %377 = vmatprep.mubr.bf16.mxu1 %v4890_v2 }
  0x22   :  { %3813 = vmatmul.mubr.msk.bf16.gmra.mxu0 %vm197_vm0, %v4590_v23 }
  0x23   :  { %284 = vmatprep.mubr.bf16.mxu0 %v4890_v2 }
  0x28   :  { %3820 = vmatmul.mubr.msk.bf16.gmra.mxu1 %vm197_vm0, %v4589_v17 }
  0x29   :  { %387 = vmatprep.mubr.bf16.mxu1 %v4890_v2 }
  0x2a   :  { %3814 = vmatmul.mubr.msk.bf16.gmra.mxu0 %vm197_vm0, %v4591_v24 }
  0x2b   :  { %294 = vmatprep.mubr.bf16.mxu0 %v4890_v2 }
  0x30   :  { %3821 = vmatmul.mubr.msk.bf16.gmra.mxu1 %vm197_vm0, %v4590_v23 }
  0x31   :  { %397 = vmatprep.mubr.bf16.mxu1 %v4890_v2 }
  0x32   :  { %3815 = vmatmul.mubr.msk.bf16.gmra.mxu0 %vm197_vm0, %v4592_v25 }
  0x33   :  { %304 = vmatprep.mubr.bf16.mxu0 %v4890_v2 }
  0x38   :  { %3822 = vmatmul.mubr.msk.bf16.gmra.mxu1 %vm197_vm0, %v4591_v24 }
  0x39   :  { %407 = vmatprep.mubr.bf16.mxu1 %v4890_v2 }
  0x3a   :  { %3816 = vmatmul.mubr.msk.bf16.gmra.mxu0 %vm197_vm0, %v4593_v26 }
  0x3b   :  { %314 = vmatprep.mubr.bf16.mxu0 %v4890_v2 }
  0x40   :  { %3823 = vmatmul.mubr.msk.bf16.gmra.mxu1 %vm197_vm0, %v4592_v25 }
  0x41   :  { %417 = vmatprep.mubr.bf16.mxu1 %v4890_v2 }
  0x42   :  { %3817 = vmatmul.mubr.msk.bf16.gmra.mxu0 %vm197_vm0, %v4594_v27 }
  0x43   :  { %324 = vmatprep.mubr.bf16.mxu0 %v4890_v2 }
  0x48   :  { %3824 = vmatmul.mubr.msk.bf16.gmra.mxu1 %vm197_vm0, %v4593_v26 }
  0x49   :  { %427 = vmatprep.mubr.bf16.mxu1 %v4890_v2 }
  0x4a   :  { %3818 = vmatmul.mubr.msk.bf16.gmra.mxu0 %vm197_vm0, %v4597_v28 }
  0x4b   :  { %4191 = vmatprep.mubr.msk.bf16.mxu0 %vm197_vm0, %v4946_v10 }
  0x50   :  { %3825 = vmatmul.mubr.msk.bf16.gmra.mxu1 %vm197_vm0, %v4594_v27 }
  0x51   :  { %437 = vmatprep.mubr.bf16.mxu1 %v4890_v2 }
  0x52   :  { %4192 = vmatmul.mubr.msk.bf16.vlgmr.msra.gmra.mxu0 %vm197_vm0, %v4589_v17 }
  0x53   :  { %4195 = vmatprep.mubr.msk.bf16.mxu0 %vm197_vm0, %v4590_v23 }
  0x58   :  { %3826 = vmatmul.mubr.msk.bf16.gmra.mxu1 %vm197_vm0, %v4597_v28 }
  0x5a   :  { %4196 = vmatmul.mubr.msk.bf16.gmra.mxu0 %vm197_vm0, %v4591_v24 }
  0x5b   :  { %4199 = vmatprep.mubr.msk.bf16.mxu0 %vm197_vm0, %v4592_v25 }
  0x62   :  { %4200 = vmatmul.mubr.msk.bf16.gmra.mxu0 %vm197_vm0, %v4593_v26 }
  0x63   :  { %4203 = vmatprep.mubr.msk.bf16.mxu0 %vm197_vm0, %v4594_v27 }
  0x6a   :  { %4204 = vmatmul.mubr.msk.bf16.gmra.mxu0 %vm197_vm0, %v4597_v28 }
  0xd2   :  { %v256_v29 = vpop.f32.mrf.mxu0 }
  0xd3   :  { %v5043_v30 = vpack.c.bf16 %v256_v29, %v256_v29 }
  0xd4   :  { %v258_v31 = vpop.f32.mrf.mxu0 }
  0xd5   :  { %705 = vrot.lane.b32.xlu0 %v5043_v30, %s4891_s0  ;;  %v5047_v33 = vpack.c.bf16 %v258_v31, %v258_v31 }
  0xd6   :  { %v260_v32 = vpop.f32.mrf.mxu0 }
  0xd7   :  { %v5049_v34 = vpack.c.bf16 %v260_v32, %v260_v32 }
  0xd8   :  { %v262_v35 = vpop.f32.mrf.mxu0 }
  0xd9   :  { %737 = vrot.lane.b32.xlu0 %v5047_v33, %s4891_s0  ;;  %707 = vrot.lane.b32.xlu1 %v5049_v34, %s4891_s0  ;;  %v5055_v37 = vpack.c.bf16 %v262_v35, %v262_v35 }
  0xda   :  { %v266_v36 = vpop.f32.mrf.mxu0 }
  0xdb   :  { %v5057_v38 = vpack.c.bf16 %v266_v36, %v266_v36 }
  0xdc   :  { %v268_v39 = vpop.f32.mrf.mxu0 }
  0xdd   :  { %v5059_v40 = vpack.c.bf16 %v268_v39, %v268_v39  ;;  %739 = vrot.lane.b32.xlu1 %v5055_v37, %s4891_s0  ;;  %709 = vrot.lane.b32.xlu0 %v5057_v38, %s4891_s0 }
  0xde   :  { %v270_v41 = vpop.f32.mrf.mxu0 }
  0xdf   :  { %v5065_v42 = vpack.c.bf16 %v270_v41, %v270_v41 }
  0xe0   :  { %v272_v43 = vpop.f32.mrf.mxu0  ;;  %v5075_v48 = vpop.f32.mrf.mxu1 }
  0xe1   :  { %741 = vrot.lane.b32.xlu1 %v5059_v40, %s4891_s0  ;;  %711 = vrot.lane.b32.xlu0 %v5065_v42, %s4891_s0  ;;  %v5071_v45 = vpack.c.bf16 %v272_v43, %v272_v43 }
  0xe2   :  { %v276_v44 = vpop.f32.mrf.mxu0  ;;  %v5083_v51 = vpop.f32.mrf.mxu1 }
  0xe3   :  { %v5073_v46 = vpack.c.bf16 %v276_v44, %v276_v44 }
  0xe4   :  { %v278_v47 = vpop.f32.mrf.mxu0  ;;  %v5087_v54 = vpop.f32.mrf.mxu1 }
  0xe5   :  { %v5077_v49 = vpack.c.bf16 %v278_v47, %v278_v47  ;;  %743 = vrot.lane.b32.xlu1 %v5071_v45, %s4891_s0  ;;  %713 = vrot.lane.b32.xlu0 %v5073_v46, %s4891_s0 }
  0xe6   :  { %v280_v50 = vpop.f32.mrf.mxu0  ;;  %v5093_v56 = vpop.f32.mrf.mxu1 }
  0xe7   :  { %v5085_v52 = vpack.c.bf16 %v280_v50, %v280_v50 }
  0xe8   :  { %v282_v53 = vpop.f32.mrf.mxu0  ;;  %v5105_v61 = vpop.f32.mrf.mxu1 }
  0xe9   :  { %745 = vrot.lane.b32.xlu0 %v5077_v49, %s4891_s0  ;;  %715 = vrot.lane.b32.xlu1 %v5085_v52, %s4891_s0  ;;  %v5095_v57 = vpack.c.bf16 %v282_v53, %v282_v53 }
  0xea   :  { %v286_v55 = vpop.f32.mrf.mxu0  ;;  %v5115_v2 = vpop.f32.mrf.mxu1 }
  0xeb   :  { %v5097_v58 = vpack.c.bf16 %v286_v55, %v286_v55 }
  0xec   :  { %v288_v59 = vpop.f32.mrf.mxu0  ;;  %v5125_v7 = vpop.f32.mrf.mxu1 }
  0xed   :  { %v5099_v60 = vpack.c.bf16 %v288_v59, %v288_v59  ;;  %747 = vrot.lane.b32.xlu1 %v5095_v57, %s4891_s0  ;;  %717 = vrot.lane.b32.xlu0 %v5097_v58, %s4891_s0  ;;  %v5193_v59 = vpack.c.bf16 %v5093_v56, %v5093_v56 }
  0xee   :  { %v290_v62 = vpop.f32.mrf.mxu0  ;;  %v5135_v12 = vpop.f32.mrf.mxu1 }
  0xef   :  { %v5107_v63 = vpack.c.bf16 %v290_v62, %v290_v62 }
  0xf0   :  { %v292_v0 = vpop.f32.mrf.mxu0  ;;  %v5145_v17 = vpop.f32.mrf.mxu1 }
  0xf1   :  { %v5109_v1 = vpack.c.bf16 %v292_v0, %v292_v0  ;;  %749 = vrot.lane.b32.xlu0 %v5099_v60, %s4891_s0  ;;  %719 = vrot.lane.b32.xlu1 %v5107_v63, %s4891_s0 }
  0xf2   :  { %v296_v3 = vpop.f32.mrf.mxu0  ;;  %v5155_v22 = vpop.f32.mrf.mxu1 }
  0xf3   :  { %v5117_v4 = vpack.c.bf16 %v296_v3, %v296_v3 }
  0xf4   :  { %v298_v5 = vpop.f32.mrf.mxu0  ;;  %v5165_v27 = vpop.f32.mrf.mxu1 }
  0xf5   :  { %v5119_v6 = vpack.c.bf16 %v298_v5, %v298_v5  ;;  %751 = vrot.lane.b32.xlu1 %v5109_v1, %s4891_s0  ;;  %721 = vrot.lane.b32.xlu0 %v5117_v4, %s4891_s0 }
  0xf6   :  { %v300_v8 = vpop.f32.mrf.mxu0  ;;  %v395_v35 = vpop.f32.mrf.mxu1 }
  0xf7   :  { %v5127_v9 = vpack.c.bf16 %v300_v8, %v300_v8  ;;  %v5201_v8 = vpack.c.bf16 %v5083_v51, %v5083_v51  ;;  %v5217_v51 = vpack.c.bf16 %v5075_v48, %v5075_v48 }
  0xf8   :  { %v302_v10 = vpop.f32.mrf.mxu0  ;;  %v399_v44 = vpop.f32.mrf.mxu1 }
  0xf9   :  { %v5129_v11 = vpack.c.bf16 %v302_v10, %v302_v10  ;;  %753 = vrot.lane.b32.xlu0 %v5119_v6, %s4891_s0  ;;  %723 = vrot.lane.b32.xlu1 %v5127_v9, %s4891_s0  ;;  %v5205_v10 = vpack.c.bf16 %v5087_v54, %v5087_v54  ;;  %v5223_v54 = vpack.c.bf16 %v5115_v2, %v5115_v2 }
  0xfa   :  { %v306_v13 = vpop.f32.mrf.mxu0  ;;  %v401_v62 = vpop.f32.mrf.mxu1 }
  0xfb   :  { %v5137_v14 = vpack.c.bf16 %v306_v13, %v306_v13  ;;  %6613 = vst [vmem:[#allocation5_spill] sm:$0xff] %v5223_v54 }
  0xfc   :  { %v308_v15 = vpop.f32.mrf.mxu0  ;;  %v403_v56 = vpop.f32.mrf.mxu1 }
  0xfd   :  { %v5139_v16 = vpack.c.bf16 %v308_v15, %v308_v15  ;;  %755 = vrot.lane.b32.xlu1 %v5129_v11, %s4891_s0  ;;  %725 = vrot.lane.b32.xlu0 %v5137_v14, %s4891_s0 }
  0xfe   :  { %v310_v18 = vpop.f32.mrf.mxu0 }
  0xff   :  { %v5147_v19 = vpack.c.bf16 %v310_v18, %v310_v18 }
 0x100   :  { %v312_v20 = vpop.f32.mrf.mxu0 }
 0x101   :  { %v5149_v21 = vpack.c.bf16 %v312_v20, %v312_v20  ;;  %757 = vrot.lane.b32.xlu0 %v5139_v16, %s4891_s0  ;;  %727 = vrot.lane.b32.xlu1 %v5147_v19, %s4891_s0 }
 0x102   :  { %v316_v23 = vpop.f32.mrf.mxu0 }
 0x103   :  { %v5157_v24 = vpack.c.bf16 %v316_v23, %v316_v23  ;;  %v405_v23 = vpop.f32.mrf.mxu1 }
 0x104   :  { %v318_v25 = vpop.f32.mrf.mxu0 }
 0x105   :  { %v5159_v26 = vpack.c.bf16 %v318_v25, %v318_v25  ;;  %759 = vrot.lane.b32.xlu1 %v5149_v21, %s4891_s0  ;;  %729 = vrot.lane.b32.xlu0 %v5157_v24, %s4891_s0  ;;  %v409_v2 = vpop.f32.mrf.mxu1 }
 0x106   :  { %v320_v28 = vpop.f32.mrf.mxu0 }
 0x107   :  { %v5167_v29 = vpack.c.bf16 %v320_v28, %v320_v28 }
 0x108   :  { %v322_v31 = vpop.f32.mrf.mxu0 }
 0x109   :  { %v5169_v32 = vpack.c.bf16 %v322_v31, %v322_v31  ;;  %761 = vrot.lane.b32.xlu0 %v5159_v26, %s4891_s0  ;;  %731 = vrot.lane.b32.xlu1 %v5167_v29, %s4891_s0 }
 0x10a   :  { %v326_v36 = vpop.f32.mrf.mxu0 }
 0x10b   :  { %v5175_v39 = vpack.c.bf16 %v326_v36, %v326_v36  ;;  %v5235_v36 = vpack.c.bf16 %v5135_v12, %v5135_v12  ;;  %v5249_v12 = vpack.c.bf16 %v5125_v7, %v5125_v7  ;;  %v5265_v7 = vpack.c.bf16 %v5165_v27, %v5165_v27 }
 0x10c   :  { %v328_v41 = vpop.f32.mrf.mxu0  ;;  %v5281_v27 = vpack.c.bf16 %v405_v23, %v405_v23 }
 0x10d   :  { %v5177_v43 = vpack.c.bf16 %v328_v41, %v328_v41  ;;  %763 = vrot.lane.b32.xlu1 %v5169_v32, %s4891_s0  ;;  %733 = vrot.lane.b32.xlu0 %v5175_v39, %s4891_s0  ;;  %6614 = vst [vmem:[#allocation6_spill] sm:$0xff] %v5235_v36  ;;  %v5241_v41 = vpack.c.bf16 %v5105_v61, %v5105_v61  ;;  %6616 = vst [vmem:[#allocation8_spill] sm:$0xff] %v5249_v12 }
 0x10e   :  { %v330_v47 = vpop.f32.mrf.mxu0  ;;  %v5255_v61 = vpack.c.bf16 %v5155_v22, %v5155_v22  ;;  %6619 = vst [vmem:[#allocation11_spill] sm:$0xff] %v5265_v7  ;;  %v5271_v22 = vpack.c.bf16 %v5145_v17, %v5145_v17  ;;  %6622 = vst [vmem:[#allocation14_spill] sm:$0xff] %v5281_v27 }
 0x10f   :  { %v5183_v50 = vpack.c.bf16 %v330_v47, %v330_v47  ;;  %6615 = vst [vmem:[#allocation7_spill] sm:$0xff] %v5241_v41 }
 0x110   :  { %v332_v53 = vpop.f32.mrf.mxu0  ;;  %6617 = vst [vmem:[#allocation9_spill] sm:$0xff] %v5255_v61  ;;  %6620 = vst [vmem:[#allocation12_spill] sm:$0xff] %v5271_v22 }
 0x111   :  { %v5185_v55 = vpack.c.bf16 %v332_v53, %v332_v53  ;;  %765 = vrot.lane.b32.xlu0 %v5177_v43, %s4891_s0  ;;  %735 = vrot.lane.b32.xlu1 %v5183_v50, %s4891_s0  ;;  %v411_v53 = vpop.f32.mrf.mxu1 }
 0x112   :  { %v5195_v0 = vpop.f32.mrf.mxu0 }
 0x114   :  { %v482_v3 = vpop.f32.mrf.mxu0 }
 0x115   :  { %v3979_v5 = vpack.c.bf16 %v482_v3, %v482_v3  ;;  %767 = vrot.lane.b32.xlu1 %v5185_v55, %s4891_s0  ;;  %980 = vrot.lane.b32.xlu0 %v5193_v59, %s4891_s0  ;;  %v5261_v3 = vpack.c.bf16 %v395_v35, %v395_v35 }
 0x116   :  { %v5209_v13 = vpop.f32.mrf.mxu0 }
 0x117   :  { %v1143_v15 = vsel %vm197_vm0, %v3979_v5, 0  ;;  %4431 = vmatprep.subr.msk.bf16.mxu1 %vm197_vm0, %v3979_v5  ;;  %6618 = vst [vmem:[#allocation10_spill] sm:$0xff] %v5261_v3  ;;  %v413_v5 = vpop.f32.mrf.mxu1 }
 0x118   :  { %v485_v18 = vpop.f32.mrf.mxu0  ;;  %4208 = vmatpush3.bf16.xpose.msra.mxu1 %v1143_v15  ;;  %v5299_v23 = vpack.c.bf16 %v413_v5, %v413_v5 }
 0x119   :  { %v5213_v20 = vpack.c.bf16 %v485_v18, %v485_v18  ;;  %978 = vrot.lane.b32.xlu1 %v5201_v8, %s4891_s0  ;;  %948 = vrot.lane.b32.xlu0 %v5205_v10, %s4891_s0  ;;  %v415_v15 = vpop.f32.mrf.mxu1  ;;  %v5275_v18 = vpack.c.bf16 %v401_v62, %v401_v62  ;;  %v5291_v62 = vpack.c.bf16 %v411_v53, %v411_v53 }
 0x11a   :  { %v4197_v25 = vpop.f32.mrf.mxu0  ;;  %6627 = vst [vmem:[#allocation19_spill] sm:$0xff] %v5299_v23 }
 0x11b   :  { %4432 = vmatprep.subr.msk.bf16.mxu1 %vm197_vm0, %v5213_v20  ;;  %v5229_v31 = vpack.c.bf16 %v4197_v25, %v4197_v25  ;;  %6621 = vst [vmem:[#allocation13_spill] sm:$0xff] %v5275_v18  ;;  %v419_v35 = vpop.f32.mrf.mxu1  ;;  %v5283_v25 = vpack.c.bf16 %v399_v44, %v399_v44  ;;  %6625 = vst [vmem:[#allocation17_spill] sm:$0xff] %v5291_v62  ;;  %v5297_v44 = vpack.c.bf16 %v415_v15, %v415_v15 }
 0x11c   :  { %v498_v28 = vpop.f32.mrf.mxu0  ;;  %v5315_v5 = vpack.c.bf16 %v419_v35, %v419_v35 }
 0x11d   :  { %v3983_v48 = vpack.c.bf16 %v498_v28, %v498_v28  ;;  %946 = vrot.lane.b32.xlu1 %v5217_v51, %s4891_s0  ;;  %982 = vrot.lane.b32.xlu0 %v5223_v54, %s4891_s0  ;;  %6623 = vst [vmem:[#allocation15_spill] sm:$0xff] %v5283_v25  ;;  %v421_v17 = vpop.f32.mrf.mxu1  ;;  %v5287_v28 = vpack.c.bf16 %v403_v56, %v403_v56  ;;  %6626 = vst [vmem:[#allocation18_spill] sm:$0xff] %v5297_v44 }
 0x11e   :  { %v5313_v15 = vpack.c.bf16 %v421_v17, %v421_v17  ;;  %6631 = vst [vmem:[#allocation23_spill] sm:$0xff] %v5315_v5 }
 0x11f   :  { %v1367_v47 = vsel %vm197_vm0, %v3983_v48, 0  ;;  %4435 = vmatprep.subr.msk.bf16.mxu0 %vm197_vm0, %v3983_v48  ;;  %6624 = vst [vmem:[#allocation16_spill] sm:$0xff] %v5287_v28  ;;  %v423_v48 = vpop.f32.mrf.mxu1 }
 0x120   :  { %4232 = vmatpush3.bf16.xpose.msra.mxu0 %v1367_v47  ;;  %v5303_v47 = vpack.c.bf16 %v409_v2, %v409_v2  ;;  %6630 = vst [vmem:[#allocation22_spill] sm:$0xff] %v5313_v15  ;;  %v5319_v2 = vpack.c.bf16 %v423_v48, %v423_v48 }
 0x121   :  { %4437 = vmatprep.subr.msk.bf16.mxu0 %vm197_vm0, %v5229_v31  ;;  %984 = vrot.lane.b32.xlu1 %v5235_v36, %s4891_s0  ;;  %v425_v56 = vpop.f32.mrf.mxu1 }
 0x122   :  { %950 = vrot.lane.b32.xlu0 %v5241_v41, %s4891_s0  ;;  %6628 = vst [vmem:[#allocation20_spill] sm:$0xff] %v5303_v47  ;;  %v5309_v53 = vpack.c.bf16 %v425_v56, %v425_v56  ;;  %6632 = vst [vmem:[#allocation24_spill] sm:$0xff] %v5319_v2 }
 0x124   :  { %6629 = vst [vmem:[#allocation21_spill] sm:$0xff] %v5309_v53 }
 0x125   :  { %952 = vrot.lane.b32.xlu1 %v5249_v12, %s4891_s0 }
 0x126   :  { %986 = vrot.lane.b32.xlu0 %v5255_v61, %s4891_s0 }
 0x129   :  { %988 = vrot.lane.b32.xlu1 %v5261_v3, %s4891_s0 }
 0x12a   :  { %956 = vrot.lane.b32.xlu0 %v5265_v7, %s4891_s0 }
 0x12d   :  { %954 = vrot.lane.b32.xlu1 %v5271_v22, %s4891_s0 }
 0x12e   :  { %990 = vrot.lane.b32.xlu0 %v5275_v18, %s4891_s0 }
 0x131   :  { %992 = vrot.lane.b32.xlu1 %v5281_v27, %s4891_s0 }
 0x132   :  { %958 = vrot.lane.b32.xlu0 %v5283_v25, %s4891_s0 }
 0x135   :  { %960 = vrot.lane.b32.xlu1 %v5287_v28, %s4891_s0 }
 0x136   :  { %994 = vrot.lane.b32.xlu0 %v5291_v62, %s4891_s0 }
 0x139   :  { %996 = vrot.lane.b32.xlu1 %v5297_v44, %s4891_s0 }
 0x13a   :  { %964 = vrot.lane.b32.xlu0 %v5299_v23, %s4891_s0 }
 0x13d   :  { %962 = vrot.lane.b32.xlu1 %v5303_v47, %s4891_s0  ;;  %v4198_v47 = vpop.f32.mrf.mxu0 }
 0x13e   :  { %1000 = vrot.lane.b32.xlu0 %v5309_v53, %s4891_s0 }
 0x141   :  { %998 = vrot.lane.b32.xlu1 %v5313_v15, %s4891_s0 }
 0x142   :  { %966 = vrot.lane.b32.xlu0 %v5315_v5, %s4891_s0  ;;  %v3981_v5 = vpack.c.bf16 %v5195_v0, %v5195_v0 }
 0x144   :  { %v1255_v0 = vsel %vm197_vm0, %v3981_v5, 0 }
 0x145   :  { %968 = vrot.lane.b32.xlu1 %v5319_v2, %s4891_s0  ;;  %v1199_v2 = vsel %vm197_vm0, %v5213_v20, 0  ;;  %v3982_v20 = vpack.c.bf16 %v5209_v13, %v5209_v13 }
 0x147   :  { %v706_v56 = vpop.permute.xlu0 %705 }
 0x148   :  { %v772_v35 = vsel %vm769_vm1, %v5043_v30, %v706_v56 }
 0x149   :  { %4209 = vmatprep.mubr.msk.bf16.mxu1 %vm197_vm0, %v772_v35 }
 0x14b   :  { %v738_v17 = vpop.permute.xlu0 %737  ;;  %v708_v53 = vpop.permute.xlu1 %707 }
 0x14c   :  { %v820_v48 = vsel %vm769_vm1, %v5047_v33, %v738_v17  ;;  %v775_v15 = vsel %vm769_vm1, %v5049_v34, %v708_v53  ;;  %v501_v33 = vpop.f32.mrf.mxu0 }
 0x14d   :  { %4210 = vmatmul.mubr.msk.bf16.vlgmr.msra.gmra.mxu1 %vm197_vm0, %v820_v48  ;;  %v3984_v23 = vpack.c.bf16 %v501_v33, %v501_v33 }
 0x14e   :  { %4214 = vmatpush3.bf16.xpose.msra.mxu1 %v1199_v2  ;;  %4215 = vmatprep.mubr.msk.bf16.mxu1 %vm197_vm0, %v775_v15  ;;  %v4201_v15 = vpop.f32.mrf.mxu0 }
 0x14f   :  { %4433 = vmatprep.subr.msk.bf16.mxu1 %vm197_vm0, %v3981_v5  ;;  %v740_v30 = vpop.permute.xlu1 %739  ;;  %v710_v56 = vpop.permute.xlu0 %709 }
 0x150   :  { %v823_v34 = vsel %vm769_vm1, %v5055_v37, %v740_v30  ;;  %v778_v53 = vsel %vm769_vm1, %v5057_v38, %v710_v56  ;;  %v514_v5 = vpop.f32.mrf.mxu0 }
 0x153   :  { %v742_v35 = vpop.permute.xlu1 %741  ;;  %v712_v17 = vpop.permute.xlu0 %711 }
 0x154   :  { %v826_v38 = vsel %vm769_vm1, %v5059_v40, %v742_v35 }
 0x155   :  { %4216 = vmatmul.mubr.msk.bf16.vlgmr.msra.gmra.mxu1 %vm197_vm0, %v823_v34  ;;  %v3987_v34 = vpack.c.bf16 %v514_v5, %v514_v5 }
 0x156   :  { %4220 = vmatpush3.bf16.xpose.msra.mxu1 %v1255_v0  ;;  %4221 = vmatprep.mubr.msk.bf16.mxu1 %vm197_vm0, %v778_v53  ;;  %v1311_v0 = vsel %vm197_vm0, %v3982_v20, 0  ;;  %v1479_v53 = vsel %vm197_vm0, %v5229_v31, 0 }
 0x157   :  { %4434 = vmatprep.subr.msk.bf16.mxu1 %vm197_vm0, %v3982_v20  ;;  %v744_v2 = vpop.permute.xlu1 %743  ;;  %v714_v48 = vpop.permute.xlu0 %713 }
 0x158   :  { %v784_v37 = vsel %vm769_vm1, %v5073_v46, %v714_v48  ;;  %v4202_v46 = vpop.f32.mrf.mxu0  ;;  %v781_v48 = vsel %vm769_vm1, %v5065_v42, %v712_v17  ;;  %v829_v42 = vsel %vm769_vm1, %v5071_v45, %v744_v2  ;;  %v3989_v17 = vpack.c.bf16 %v4201_v15, %v4201_v15 }
 0x159   :  { %4233 = vmatprep.mubr.msk.bf16.mxu0 %vm197_vm0, %v784_v37  ;;  %v1591_v37 = vsel %vm197_vm0, %v3987_v34, 0 }
 0x15a   :  { %v517_v33 = vpop.f32.mrf.mxu0 }
 0x15b   :  { %v746_v13 = vpop.permute.xlu0 %745  ;;  %v716_v30 = vpop.permute.xlu1 %715 }
 0x15c   :  { %v832_v56 = vsel %vm769_vm1, %v5077_v49, %v746_v13  ;;  %v3986_v13 = vpack.c.bf16 %v4198_v47, %v4198_v47 }
 0x15d   :  { %4222 = vmatmul.mubr.msk.bf16.vlgmr.msra.gmra.mxu1 %vm197_vm0, %v826_v38  ;;  %4234 = vmatmul.mubr.msk.bf16.vlgmr.msra.gmra.mxu0 %vm197_vm0, %v832_v56  ;;  %v1423_v38 = vsel %vm197_vm0, %v3984_v23, 0  ;;  %v4205_v56 = vpop.f32.mrf.mxu0 }
 0x15e   :  { %4226 = vmatpush3.bf16.xpose.msra.mxu1 %v1311_v0  ;;  %4244 = vmatpush3.bf16.xpose.msra.mxu0 %v1479_v53  ;;  %v3988_v0 = vpack.c.bf16 %v517_v33, %v517_v33 }
 0x15f   :  { %4227 = vmatprep.mubr.msk.bf16.mxu1 %vm197_vm0, %v781_v48  ;;  %4436 = vmatprep.subr.msk.bf16.mxu1 %vm197_vm0, %v3984_v23  ;;  %v748_v40 = vpop.permute.xlu1 %747  ;;  %v718_v49 = vpop.permute.xlu0 %717  ;;  %v1703_v23 = vsel %vm197_vm0, %v3989_v17, 0  ;;  %v1535_v48 = vsel %vm197_vm0, %v3986_v13, 0 }
 0x160   :  { %v790_v31 = vsel %vm769_vm1, %v5097_v58, %v718_v49  ;;  %4439 = vmatprep.subr.msk.bf16.mxu0 %vm197_vm0, %v3987_v34  ;;  %v787_v58 = vsel %vm769_vm1, %v5085_v52, %v716_v30  ;;  %v530_v52 = vpop.f32.mrf.mxu0  ;;  %v835_v30 = vsel %vm769_vm1, %v5095_v57, %v748_v40  ;;  %v3990_v40 = vpack.c.bf16 %v4202_v46, %v4202_v46 }
 0x161   :  { %4245 = vmatprep.mubr.msk.bf16.mxu0 %vm197_vm0, %v790_v31  ;;  %v3991_v53 = vpack.c.bf16 %v530_v52, %v530_v52 }
 0x163   :  { %v750_v35 = vpop.permute.xlu0 %749  ;;  %v720_v20 = vpop.permute.xlu1 %719 }
 0x164   :  { %v838_v5 = vsel %vm769_vm1, %v5099_v60, %v750_v35 }
 0x165   :  { %4228 = vmatmul.mubr.msk.bf16.vlgmr.msra.gmra.mxu1 %vm197_vm0, %v829_v42  ;;  %4246 = vmatmul.mubr.msk.bf16.vlgmr.msra.gmra.mxu0 %vm197_vm0, %v838_v5  ;;  %v1815_v42 = vsel %vm197_vm0, %v3991_v53, 0 }
 0x166   :  { %4238 = vmatpush3.bf16.xpose.msra.mxu1 %v1423_v38  ;;  %4239 = vmatprep.mubr.msk.bf16.mxu1 %vm197_vm0, %v787_v58 }
 0x167   :  { %4438 = vmatprep.subr.msk.bf16.mxu1 %vm197_vm0, %v3986_v13  ;;  %4256 = vmatpush3.bf16.xpose.msra.mxu0 %v1591_v37  ;;  %v752_v45 = vpop.permute.xlu1 %751  ;;  %v722_v15 = vpop.permute.xlu0 %721 }
 0x168   :  { %v796_v60 = vsel %vm769_vm1, %v5117_v4, %v722_v15  ;;  %4441 = vmatprep.subr.msk.bf16.mxu0 %vm197_vm0, %v3989_v17  ;;  %v793_v4 = vsel %vm769_vm1, %v5107_v63, %v720_v20  ;;  %v1647_v63 = vsel %vm197_vm0, %v3988_v0, 0  ;;  %v841_v35 = vsel %vm769_vm1, %v5109_v1, %v752_v45  ;;  %v4206_v17 = vpop.f32.mrf.mxu0 }
 0x169   :  { %4257 = vmatprep.mubr.msk.bf16.mxu0 %vm197_vm0, %v796_v60  ;;  %v3993_v20 = vpack.c.bf16 %v4205_v56, %v4205_v56 }
 0x16b   :  { %v754_v47 = vpop.permute.xlu0 %753  ;;  %v724_v2 = vpop.permute.xlu1 %723  ;;  %v1927_v56 = vsel %vm197_vm0, %v3993_v20, 0 }
 0x16c   :  { %v844_v34 = vsel %vm769_vm1, %v5119_v6, %v754_v47  ;;  %v799_v37 = vsel %vm769_vm1, %v5127_v9, %v724_v2  ;;  %v1759_v9 = vsel %vm197_vm0, %v3990_v40, 0 }
 0x16d   :  { %4240 = vmatmul.mubr.msk.bf16.vlgmr.msra.gmra.mxu1 %vm197_vm0, %v835_v30 }
 0x16e   :  { %4250 = vmatpush3.bf16.xpose.msra.mxu1 %v1535_v48  ;;  %4258 = vmatmul.mubr.msk.bf16.vlgmr.msra.gmra.mxu0 %vm197_vm0, %v844_v34 }
 0x16f   :  { %4251 = vmatprep.mubr.msk.bf16.mxu1 %vm197_vm0, %v793_v4  ;;  %4268 = vmatpush3.bf16.xpose.msra.mxu0 %v1703_v23  ;;  %v756_v49 = vpop.permute.xlu1 %755  ;;  %v726_v57 = vpop.permute.xlu0 %725  ;;  %v3994_v23 = vpack.c.bf16 %v4206_v17, %v4206_v17 }
 0x170   :  { %v802_v6 = vsel %vm769_vm1, %v5137_v14, %v726_v57  ;;  %4440 = vmatprep.subr.msk.bf16.mxu1 %vm197_vm0, %v3988_v0  ;;  %4443 = vmatprep.subr.msk.bf16.mxu0 %vm197_vm0, %v3991_v53  ;;  %v847_v58 = vsel %vm769_vm1, %v5129_v11, %v756_v49 }
 0x171   :  { %4269 = vmatprep.mubr.msk.bf16.mxu0 %vm197_vm0, %v802_v6  ;;  %v1983_v53 = vsel %vm197_vm0, %v3994_v23, 0 }
 0x173   :  { %v758_v31 = vpop.permute.xlu0 %757  ;;  %v728_v33 = vpop.permute.xlu1 %727 }
 0x174   :  { %v850_v14 = vsel %vm769_vm1, %v5139_v16, %v758_v31  ;;  %v533_v16 = vpop.f32.mrf.mxu0  ;;  %v805_v15 = vsel %vm769_vm1, %v5147_v19, %v728_v33 }
 0x175   :  { %4252 = vmatmul.mubr.msk.bf16.vlgmr.msra.gmra.mxu1 %vm197_vm0, %v841_v35 }
 0x176   :  { %4270 = vmatmul.mubr.msk.bf16.vlgmr.msra.gmra.mxu0 %vm197_vm0, %v850_v14  ;;  %4262 = vmatpush3.bf16.xpose.msra.mxu1 %v1647_v63 }
 0x177   :  { %4263 = vmatprep.mubr.msk.bf16.mxu1 %vm197_vm0, %v799_v37  ;;  %4280 = vmatpush3.bf16.xpose.msra.mxu0 %v1815_v42  ;;  %v760_v46 = vpop.permute.xlu1 %759  ;;  %v730_v1 = vpop.permute.xlu0 %729 }
 0x178   :  { %v808_v5 = vsel %vm769_vm1, %v5157_v24, %v730_v1  ;;  %4442 = vmatprep.subr.msk.bf16.mxu1 %vm197_vm0, %v3990_v40  ;;  %4445 = vmatprep.subr.msk.bf16.mxu0 %vm197_vm0, %v3993_v20  ;;  %v3992_v24 = vpack.c.bf16 %v533_v16, %v533_v16  ;;  %v853_v30 = vsel %vm769_vm1, %v5149_v21, %v760_v46 }
 0x179   :  { %4281 = vmatprep.mubr.msk.bf16.mxu0 %vm197_vm0, %v808_v5 }
 0x17a   :  { %v1871_v19 = vsel %vm197_vm0, %v3992_v24, 0 }
 0x17b   :  { %v762_v13 = vpop.permute.xlu0 %761  ;;  %v732_v38 = vpop.permute.xlu1 %731 }
 0x17c   :  { %v856_v45 = vsel %vm769_vm1, %v5159_v26, %v762_v13  ;;  %v6567_v26 = vmov 0.0  }
 0x17d   :  { %4264 = vmatmul.mubr.msk.bf16.vlgmr.msra.gmra.mxu1 %vm197_vm0, %v847_v58 }
 0x17e   :  { %4282 = vmatmul.mubr.msk.bf16.vlgmr.msra.gmra.mxu0 %vm197_vm0, %v856_v45  ;;  %4274 = vmatpush3.bf16.xpose.msra.mxu1 %v1759_v9 }
 0x17f   :  { %4275 = vmatprep.mubr.msk.bf16.mxu1 %vm197_vm0, %v805_v15  ;;  %4292 = vmatpush3.bf16.xpose.msra.mxu0 %v1927_v56  ;;  %v764_v60 = vpop.permute.xlu1 %763  ;;  %v734_v52 = vpop.permute.xlu0 %733 }
 0x180   :  { %v814_v11 = vsel %vm769_vm1, %v5175_v39, %v734_v52  ;;  %4444 = vmatprep.subr.msk.bf16.mxu1 %vm197_vm0, %v3992_v24  ;;  %4303 = vmatprep.subr.bf16.mxu0 %v6567_v26  ;;  %v811_v39 = vsel %vm769_vm1, %v5167_v29, %v732_v38  ;;  %v859_v21 = vsel %vm769_vm1, %v5169_v32, %v764_v60 }
 0x181   :  { %4293 = vmatprep.mubr.msk.bf16.mxu0 %vm197_vm0, %v814_v11 }
 0x183   :  { %v766_v47 = vpop.permute.xlu0 %765  ;;  %v736_v2 = vpop.permute.xlu1 %735 }
 0x184   :  { %v862_v34 = vsel %vm769_vm1, %v5177_v43, %v766_v47  ;;  %v817_v29 = vsel %vm769_vm1, %v5183_v50, %v736_v2 }
 0x185   :  { %4276 = vmatmul.mubr.msk.bf16.vlgmr.msra.gmra.mxu1 %vm197_vm0, %v853_v30 }
 0x186   :  { %4294 = vmatmul.mubr.msk.bf16.vlgmr.msra.gmra.mxu0 %vm197_vm0, %v862_v34  ;;  %4286 = vmatpush3.bf16.xpose.msra.mxu1 %v1871_v19 }
 0x187   :  { %4287 = vmatprep.mubr.msk.bf16.mxu1 %vm197_vm0, %v811_v39  ;;  %v768_v0 = vpop.permute.xlu1 %767  ;;  %4446 = vmatprep.subr.msk.bf16.mxu1 %vm197_vm0, %v3994_v23  ;;  %v981_v4 = vpop.permute.xlu0 %980 }
 0x188   :  { %v1080_v50 = vsel %vm769_vm1, %v5193_v59, %v981_v4 }
 0x18b   :  { %v979_v48 = vpop.permute.xlu1 %978  ;;  %v949_v57 = vpop.permute.xlu0 %948 }
 0x18c   :  { %v1076_v43 = vsel %vm769_vm1, %v5201_v8, %v979_v48  ;;  %v865_v8 = vsel %vm769_vm1, %v5185_v55, %v768_v0  ;;  %v1016_v6 = vsel %vm769_vm1, %v5205_v10, %v949_v57 }
 0x18d   :  { %4288 = vmatmul.mubr.msk.bf16.vlgmr.msra.gmra.mxu1 %vm197_vm0, %v859_v21  ;;  %4304 = vmatpush3.bf16.msra.mxu0 %v1076_v43 }
 0x18e   :  { %4298 = vmatpush3.bf16.xpose.msra.mxu1 %v1983_v53  ;;  %4299 = vmatprep.mubr.msk.bf16.mxu1 %vm197_vm0, %v817_v29 }
 0x18f   :  { %4311 = vmatprep.subr.bf16.mxu1 %v6567_v26  ;;  %v947_v49 = vpop.permute.xlu1 %946  ;;  %4305 = vmatprep.subr.bf16.mxu0 %v6567_v26  ;;  %v5645_v25 = vpop.permute.xlu0 %982 }
 0x190   :  { %v1012_v32 = vsel %vm769_vm1, %v5217_v51, %v947_v49  ;;  %v5469_v51 = vpop.f32.mrf.mxu1  ;;  %6641 = vst [vmem:[#allocation33_spill] sm:$0xff] %v5645_v25 }
 0x191   :  { %4306 = vmatpush3.bf16.msra.mxu0 %v1012_v32  ;;  %6633 = vst [vmem:[#allocation25_spill] sm:$0xff] %v5469_v51 }
 0x192   :  { %4319 = vmatprep.subr.bf16.mxu0 %v6567_v26  ;;  %v5471_v40 = vpop.f32.mrf.mxu1 }
 0x193   :  { %6634 = vst [vmem:[#allocation26_spill] sm:$0xff] %v5471_v40 }
 0x194   :  { %v5473_v59 = vpop.f32.mrf.mxu1  ;;  %v5661_v7 = vpop.permute.xlu0 %950 }
 0x195   :  { %4300 = vmatmul.mubr.msk.bf16.vlgmr.msra.gmra.mxu1 %vm197_vm0, %v865_v8  ;;  %6635 = vst [vmem:[#allocation27_spill] sm:$0xff] %v5473_v59  ;;  %6643 = vst [vmem:[#allocation35_spill] sm:$0xff] %v5661_v7 }
 0x196   :  { %4312 = vmatpush3.bf16.msra.mxu1 %v1080_v50  ;;  %v5475_v63 = vpop.f32.mrf.mxu1 }
 0x197   :  { %4313 = vmatprep.subr.bf16.mxu1 %v6567_v26  ;;  %6636 = vst [vmem:[#allocation28_spill] sm:$0xff] %v5475_v63 }
 0x198   :  { %v5477_v55 = vpop.f32.mrf.mxu1  ;;  %v5677_v41 = vpop.permute.xlu0 %986 }
 0x199   :  { %6637 = vst [vmem:[#allocation29_spill] sm:$0xff] %v5477_v55  ;;  %6646 = vst [vmem:[#allocation38_spill] sm:$0xff] %v5677_v41 }
 0x19a   :  { %4314 = vmatpush3.bf16.msra.mxu1 %v1016_v6  ;;  %v5479_v31 = vpop.f32.mrf.mxu1 }
 0x19b   :  { %4327 = vmatprep.subr.bf16.mxu1 %v6567_v26  ;;  %6638 = vst [vmem:[#allocation30_spill] sm:$0xff] %v5479_v31 }
 0x19c   :  { %v5481_v33 = vpop.f32.mrf.mxu1  ;;  %v5693_v41 = vpop.permute.xlu0 %956 }
 0x19d   :  { %6639 = vst [vmem:[#allocation31_spill] sm:$0xff] %v5481_v33  ;;  %6649 = vst [vmem:[#allocation41_spill] sm:$0xff] %v5693_v41 }
 0x19e   :  { %v5483_v10 = vpop.f32.mrf.mxu1 }
 0x19f   :  { %6640 = vst [vmem:[#allocation32_spill] sm:$0xff] %v5483_v10 }
 0x1a0   :  { %v5709_v41 = vpop.permute.xlu0 %990 }
 0x1a1   :  { %6653 = vst [vmem:[#allocation45_spill] sm:$0xff] %v5709_v41 }
 0x1a4   :  { %v5725_v41 = vpop.permute.xlu0 %958 }
 0x1a5   :  { %6657 = vst [vmem:[#allocation49_spill] sm:$0xff] %v5725_v41 }
 0x1a8   :  { %v5741_v41 = vpop.permute.xlu0 %994 }
 0x1a9   :  { %6662 = vst [vmem:[#allocation54_spill] sm:$0xff] %v5741_v41 }
 0x1ac   :  { %v5757_v41 = vpop.permute.xlu0 %964 }
 0x1ad   :  { %6667 = vst [vmem:[#allocation59_spill] sm:$0xff] %v5757_v41 }
 0x20d   :  { %v5485_v35 = vpop.f32.mrf.mxu1 }
 0x20e   :  { %v2041_v20 = vsel %vm2034_vm2, %v5485_v35, -inf }
 0x20f   :  { %2042 = vmax.xlane.f32.xlu0 %v2041_v20  ;;  %v5489_v42 = vpop.f32.mrf.mxu1 }
 0x210   :  { %v2035_v14 = vsel %vm2034_vm2, %v5489_v42, -inf }
 0x211   :  { %2036 = vmax.xlane.f32.xlu1 %v2035_v14  ;;  %v5493_v17 = vpop.f32.mrf.mxu1 }
 0x212   :  { %v2044_v46 = vsel %vm2034_vm2, %v5493_v17, -inf }
 0x213   :  { %v5495_v37 = vpop.f32.mrf.mxu1 }
 0x214   :  { %v2038_v1 = vsel %vm2034_vm2, %v5495_v37, -inf }
 0x215   :  { %2045 = vmax.xlane.f32.xlu1 %v2044_v46  ;;  %2039 = vmax.xlane.f32.xlu0 %v2038_v1  ;;  %v5501_v5 = vpop.f32.mrf.mxu1 }
 0x216   :  { %v2053_v9 = vsel %vm2034_vm2, %v5501_v5, -inf }
 0x217   :  { %v5503_v16 = vpop.f32.mrf.mxu1 }
 0x218   :  { %v2047_v58 = vsel %vm2034_vm2, %v5503_v16, -inf }
 0x219   :  { %2054 = vmax.xlane.f32.xlu0 %v2053_v9  ;;  %v5507_v13 = vpop.f32.mrf.mxu1 }
 0x21a   :  { %v2056_v15 = vsel %vm2034_vm2, %v5507_v13, -inf }
 0x21b   :  { %v5509_v38 = vpop.f32.mrf.mxu1 }
 0x21c   :  { %v2050_v56 = vsel %vm2034_vm2, %v5509_v38, -inf }
 0x21d   :  { %2048 = vmax.xlane.f32.xlu0 %v2047_v58  ;;  %2051 = vmax.xlane.f32.xlu1 %v2050_v56  ;;  %v5515_v45 = vpop.f32.mrf.mxu1  ;;  %v5523_v52 = vpop.f32.mrf.mxu0 }
 0x21e   :  { %v2065_v60 = vsel %vm2034_vm2, %v5515_v45, -inf  ;;  %v2089_v19 = vsel %vm2034_vm2, %v5523_v52, -inf }
 0x21f   :  { %v5517_v24 = vpop.f32.mrf.mxu1  ;;  %v5539_v39 = vpop.f32.mrf.mxu0 }
 0x220   :  { %v2059_v34 = vsel %vm2034_vm2, %v5517_v24, -inf  ;;  %v2083_v48 = vsel %vm2034_vm2, %v5539_v39, -inf }
 0x221   :  { %2057 = vmax.xlane.f32.xlu0 %v2056_v15  ;;  %2066 = vmax.xlane.f32.xlu1 %v2065_v60  ;;  %v5525_v11 = vpop.f32.mrf.mxu1  ;;  %v5553_v4 = vpop.f32.mrf.mxu0 }
 0x222   :  { %v2068_v29 = vsel %vm2034_vm2, %v5525_v11, -inf  ;;  %v2092_v50 = vsel %vm2034_vm2, %v5553_v4, -inf }
 0x223   :  { %v5527_v23 = vpop.f32.mrf.mxu1  ;;  %v5567_v20 = vpop.f32.mrf.mxu0 }
 0x224   :  { %v2062_v6 = vsel %vm2034_vm2, %v5527_v23, -inf  ;;  %v2086_v1 = vsel %vm2034_vm2, %v5567_v20, -inf }
 0x225   :  { %v5531_v47 = vpop.f32.mrf.mxu1  ;;  %2090 = vmax.xlane.f32.xlu1 %v2089_v19  ;;  %v5575_v9 = vpop.f32.mrf.mxu0 }
 0x226   :  { %v2077_v2 = vsel %vm2034_vm2, %v5531_v47, -inf  ;;  %v2113_v15 = vsel %vm2034_vm2, %v5575_v9, -inf }
 0x227   :  { %2078 = vmax.xlane.f32.xlu0 %v2077_v2  ;;  %v5535_v30 = vpop.f32.mrf.mxu1  ;;  %v5583_v60 = vpop.f32.mrf.mxu0 }
 0x228   :  { %v2071_v0 = vsel %vm2034_vm2, %v5535_v30, -inf }
 0x229   :  { %2060 = vmax.xlane.f32.xlu1 %v2059_v34  ;;  %v5543_v53 = vpop.f32.mrf.mxu1  ;;  %v2107_v34 = vsel %vm2034_vm2, %v5583_v60, -inf }
 0x22a   :  { %v2080_v21 = vsel %vm2034_vm2, %v5543_v53, -inf }
 0x22b   :  { %2072 = vmax.xlane.f32.xlu0 %v2071_v0  ;;  %v5549_v43 = vpop.f32.mrf.mxu1  ;;  %v5591_v0 = vpop.f32.mrf.mxu0 }
 0x22c   :  { %v2074_v49 = vsel %vm2034_vm2, %v5549_v43, -inf }
 0x22d   :  { %2084 = vmax.xlane.f32.xlu1 %v2083_v48  ;;  %v5557_v32 = vpop.f32.mrf.mxu1 }
 0x22e   :  { %v2101_v8 = vsel %vm2034_vm2, %v5557_v32, -inf }
 0x22f   :  { %2081 = vmax.xlane.f32.xlu0 %v2080_v21  ;;  %v5563_v57 = vpop.f32.mrf.mxu1 }
 0x230   :  { %v2095_v14 = vsel %vm2034_vm2, %v5563_v57, -inf }
 0x231   :  { %2069 = vmax.xlane.f32.xlu1 %v2068_v29  ;;  %v5571_v46 = vpop.f32.mrf.mxu1  ;;  %v2116_v29 = vsel %vm2034_vm2, %v5591_v0, -inf }
 0x232   :  { %v2104_v58 = vsel %vm2034_vm2, %v5571_v46, -inf }
 0x233   :  { %2075 = vmax.xlane.f32.xlu0 %v2074_v49  ;;  %v5579_v56 = vpop.f32.mrf.mxu1  ;;  %v5599_v49 = vpop.f32.mrf.mxu0 }
 0x234   :  { %v2098_v19 = vsel %vm2034_vm2, %v5579_v56, -inf }
 0x235   :  { %2093 = vmax.xlane.f32.xlu1 %v2092_v50  ;;  %v5587_v2 = vpop.f32.mrf.mxu1 }
 0x236   :  { %v2125_v48 = vsel %vm2034_vm2, %v5587_v2, -inf }
 0x237   :  { %2102 = vmax.xlane.f32.xlu0 %v2101_v8  ;;  %v5595_v21 = vpop.f32.mrf.mxu1 }
 0x238   :  { %v2119_v50 = vsel %vm2034_vm2, %v5595_v21, -inf }
 0x239   :  { %2063 = vmax.xlane.f32.xlu1 %v2062_v6  ;;  %v5603_v8 = vpop.f32.mrf.mxu1  ;;  %v2110_v6 = vsel %vm2034_vm2, %v5599_v49, -inf }
 0x23b   :  { %2096 = vmax.xlane.f32.xlu0 %v2095_v14  ;;  %v5607_v14 = vpop.f32.mrf.mxu0 }
 0x23d   :  { %2087 = vmax.xlane.f32.xlu1 %v2086_v1  ;;  %v2128_v1 = vsel %vm2034_vm2, %v5603_v8, -inf }
 0x23f   :  { %2105 = vmax.xlane.f32.xlu0 %v2104_v58  ;;  %v5611_v58 = vpop.f32.mrf.mxu1 }
 0x241   :  { %2114 = vmax.xlane.f32.xlu1 %v2113_v15  ;;  %v2137_v15 = vsel %vm2034_vm2, %v5607_v14, -inf }
 0x243   :  { %2099 = vmax.xlane.f32.xlu0 %v2098_v19  ;;  %v5615_v19 = vpop.f32.mrf.mxu0 }
 0x245   :  { %2108 = vmax.xlane.f32.xlu1 %v2107_v34  ;;  %v2122_v34 = vsel %vm2034_vm2, %v5611_v58, -inf }
 0x247   :  { %2126 = vmax.xlane.f32.xlu0 %v2125_v48  ;;  %v5619_v48 = vpop.f32.mrf.mxu1 }
 0x249   :  { %2117 = vmax.xlane.f32.xlu1 %v2116_v29  ;;  %v2131_v29 = vsel %vm2034_vm2, %v5615_v19, -inf }
 0x24b   :  { %2120 = vmax.xlane.f32.xlu0 %v2119_v50  ;;  %v5623_v50 = vpop.f32.mrf.mxu0 }
 0x24d   :  { %2111 = vmax.xlane.f32.xlu1 %v2110_v6  ;;  %v2149_v6 = vsel %vm2034_vm2, %v5619_v48, -inf  ;;  %v5631_v26 = vpop.f32.mrf.mxu0 }
 0x24f   :  { %2129 = vmax.xlane.f32.xlu0 %v2128_v1  ;;  %v5627_v1 = vpop.f32.mrf.mxu1  ;;  %v5639_v62 = vpop.f32.mrf.mxu0 }
 0x251   :  { %2138 = vmax.xlane.f32.xlu1 %v2137_v15  ;;  %v2140_v15 = vsel %vm2034_vm2, %v5623_v50, -inf  ;;  %v5635_v44 = vpop.f32.mrf.mxu1  ;;  %v5649_v27 = vpop.f32.mrf.mxu0 }
 0x252   :  { %v2155_v22 = vsel %vm2034_vm2, %v5649_v27, -inf }
 0x253   :  { %2123 = vmax.xlane.f32.xlu0 %v2122_v34  ;;  %v2143_v34 = vsel %vm2034_vm2, %v5627_v1, -inf  ;;  %v5643_v28 = vpop.f32.mrf.mxu1 }
 0x254   :  { %v2146_v18 = vsel %vm2034_vm2, %v5643_v28, -inf }
 0x255   :  { %2132 = vmax.xlane.f32.xlu1 %v2131_v29  ;;  %v2134_v29 = vsel %vm2034_vm2, %v5631_v26, -inf }
 0x257   :  { %2150 = vmax.xlane.f32.xlu0 %v2149_v6  ;;  %v2152_v6 = vsel %vm2034_vm2, %v5635_v44, -inf }
 0x259   :  { %2141 = vmax.xlane.f32.xlu1 %v2140_v15  ;;  %v2161_v15 = vsel %vm2034_vm2, %v5639_v62, -inf }
 0x25b   :  { %2144 = vmax.xlane.f32.xlu0 %v2143_v34  ;;  %v5651_v34 = vpop.permute.xlu1 %984 }
 0x25c   :  { %6642 = vst [vmem:[#allocation34_spill] sm:$0xff] %v5651_v34 }
 0x25d   :  { %2135 = vmax.xlane.f32.xlu1 %v2134_v29  ;;  %v5655_v29 = vpop.f32.mrf.mxu1 }
 0x25e   :  { %v2173_v3 = vsel %vm2034_vm2, %v5655_v29, -inf }
 0x25f   :  { %2153 = vmax.xlane.f32.xlu0 %v2152_v6  ;;  %v5659_v6 = vpop.f32.mrf.mxu0  ;;  %v5667_v61 = vpop.permute.xlu1 %952 }
 0x260   :  { %6644 = vst [vmem:[#allocation36_spill] sm:$0xff] %v5667_v61  ;;  %v2164_v55 = vsel %vm2034_vm2, %v5659_v6, -inf }
 0x261   :  { %2162 = vmax.xlane.f32.xlu1 %v2161_v15  ;;  %v5665_v15 = vpop.f32.mrf.mxu1 }
 0x262   :  { %v2167_v12 = vsel %vm2034_vm2, %v5665_v15, -inf }
 0x263   :  { %2147 = vmax.xlane.f32.xlu0 %v2146_v18  ;;  %v5671_v18 = vpop.f32.mrf.mxu0  ;;  %v5683_v61 = vpop.permute.xlu1 %988 }
 0x264   :  { %v2158_v7 = vsel %vm2034_vm2, %v5671_v18, -inf  ;;  %6647 = vst [vmem:[#allocation39_spill] sm:$0xff] %v5683_v61 }
 0x265   :  { %2156 = vmax.xlane.f32.xlu1 %v2155_v22  ;;  %v5675_v22 = vpop.f32.mrf.mxu1 }
 0x266   :  { %6645 = vst [vmem:[#allocation37_spill] sm:$0xff] %v5675_v22  ;;  %v2176_v10 = vsel %vm2034_vm2, %v5675_v22, -inf }
 0x267   :  { %2174 = vmax.xlane.f32.xlu0 %v2173_v3  ;;  %v5681_v3 = vpop.f32.mrf.mxu0  ;;  %v5699_v61 = vpop.permute.xlu1 %954 }
 0x268   :  { %v2185_v36 = vsel %vm2034_vm2, %v5681_v3, -inf  ;;  %6651 = vst [vmem:[#allocation43_spill] sm:$0xff] %v5699_v61 }
 0x269   :  { %2165 = vmax.xlane.f32.xlu1 %v2164_v55  ;;  %v5687_v55 = vpop.f32.mrf.mxu1 }
 0x26a   :  { %6648 = vst [vmem:[#allocation40_spill] sm:$0xff] %v5687_v55  ;;  %v2170_v34 = vsel %vm2034_vm2, %v5687_v55, -inf }
 0x26b   :  { %2168 = vmax.xlane.f32.xlu0 %v2167_v12  ;;  %v5691_v12 = vpop.f32.mrf.mxu0  ;;  %v5715_v61 = vpop.permute.xlu1 %992 }
 0x26c   :  { %v2179_v54 = vsel %vm2034_vm2, %v5691_v12, -inf  ;;  %6654 = vst [vmem:[#allocation46_spill] sm:$0xff] %v5715_v61 }
 0x26d   :  { %2159 = vmax.xlane.f32.xlu1 %v2158_v7  ;;  %v5697_v7 = vpop.f32.mrf.mxu1 }
 0x26e   :  { %6650 = vst [vmem:[#allocation42_spill] sm:$0xff] %v5697_v7  ;;  %v2197_v25 = vsel %vm2034_vm2, %v5697_v7, -inf }
 0x26f   :  { %2177 = vmax.xlane.f32.xlu0 %v2176_v10  ;;  %v5703_v10 = vpop.f32.mrf.mxu0  ;;  %v5731_v61 = vpop.permute.xlu1 %960 }
 0x270   :  { %v2188_v33 = vsel %vm2034_vm2, %v5703_v10, -inf  ;;  %6659 = vst [vmem:[#allocation51_spill] sm:$0xff] %v5731_v61 }
 0x271   :  { %2186 = vmax.xlane.f32.xlu1 %v2185_v36  ;;  %v5707_v36 = vpop.f32.mrf.mxu1 }
 0x272   :  { %6652 = vst [vmem:[#allocation44_spill] sm:$0xff] %v5707_v36  ;;  %v2191_v31 = vsel %vm2034_vm2, %v5707_v36, -inf }
 0x273   :  { %2171 = vmax.xlane.f32.xlu0 %v2170_v34  ;;  %v5713_v34 = vpop.f32.mrf.mxu0  ;;  %v5747_v61 = vpop.permute.xlu1 %996 }
 0x274   :  { %v2182_v59 = vsel %vm2034_vm2, %v5713_v34, -inf  ;;  %6664 = vst [vmem:[#allocation56_spill] sm:$0xff] %v5747_v61 }
 0x275   :  { %2180 = vmax.xlane.f32.xlu1 %v2179_v54  ;;  %v5719_v54 = vpop.f32.mrf.mxu1 }
 0x276   :  { %6655 = vst [vmem:[#allocation47_spill] sm:$0xff] %v5719_v54  ;;  %v2200_v51 = vsel %vm2034_vm2, %v5719_v54, -inf }
 0x277   :  { %2198 = vmax.xlane.f32.xlu0 %v2197_v25  ;;  %v5723_v25 = vpop.f32.mrf.mxu0  ;;  %v5763_v61 = vpop.permute.xlu1 %962 }
 0x278   :  { %6656 = vst [vmem:[#allocation48_spill] sm:$0xff] %v5723_v25  ;;  %v2209_v40 = vsel %vm2034_vm2, %v5723_v25, -inf  ;;  %6669 = vst [vmem:[#allocation61_spill] sm:$0xff] %v5763_v61 }
 0x279   :  { %2189 = vmax.xlane.f32.xlu1 %v2188_v33  ;;  %v5729_v33 = vpop.f32.mrf.mxu1 }
 0x27a   :  { %6658 = vst [vmem:[#allocation50_spill] sm:$0xff] %v5729_v33  ;;  %v2194_v63 = vsel %vm2034_vm2, %v5729_v33, -inf }
 0x27b   :  { %2192 = vmax.xlane.f32.xlu0 %v2191_v31  ;;  %v5735_v31 = vpop.f32.mrf.mxu0  ;;  %v5773_v41 = vpop.permute.xlu1 %998 }
 0x27c   :  { %6660 = vst [vmem:[#allocation52_spill] sm:$0xff] %v5735_v31  ;;  %v2203_v54 = vsel %vm2034_vm2, %v5735_v31, -inf  ;;  %6672 = vst [vmem:[#allocation64_spill] sm:$0xff] %v5773_v41 }
 0x27d   :  { %2183 = vmax.xlane.f32.xlu1 %v2182_v59  ;;  %v5739_v59 = vpop.f32.mrf.mxu1 }
 0x27e   :  { %6661 = vst [vmem:[#allocation53_spill] sm:$0xff] %v5739_v59  ;;  %v2221_v36 = vsel %vm2034_vm2, %v5739_v59, -inf }
 0x27f   :  { %2201 = vmax.xlane.f32.xlu0 %v2200_v51  ;;  %v5745_v51 = vpop.f32.mrf.mxu0  ;;  %v5779_v61 = vpop.permute.xlu1 %968 }
 0x280   :  { %6663 = vst [vmem:[#allocation55_spill] sm:$0xff] %v5745_v51  ;;  %v2212_v33 = vsel %vm2034_vm2, %v5745_v51, -inf  ;;  %6674 = vst [vmem:[#allocation66_spill] sm:$0xff] %v5779_v61 }
 0x281   :  { %2210 = vmax.xlane.f32.xlu1 %v2209_v40  ;;  %v5751_v40 = vpop.f32.mrf.mxu1 }
 0x282   :  { %6665 = vst [vmem:[#allocation57_spill] sm:$0xff] %v5751_v40  ;;  %v2215_v7 = vsel %vm2034_vm2, %v5751_v40, -inf }
 0x283   :  { %2195 = vmax.xlane.f32.xlu0 %v2194_v63  ;;  %v5755_v63 = vpop.f32.mrf.mxu0 }
 0x284   :  { %6666 = vst [vmem:[#allocation58_spill] sm:$0xff] %v5755_v63  ;;  %v2206_v59 = vsel %vm2034_vm2, %v5755_v63, -inf }
 0x285   :  { %2204 = vmax.xlane.f32.xlu1 %v2203_v54  ;;  %v5761_v54 = vpop.f32.mrf.mxu1 }
 0x286   :  { %6668 = vst [vmem:[#allocation60_spill] sm:$0xff] %v5761_v54  ;;  %v2224_v51 = vsel %vm2034_vm2, %v5761_v54, -inf }
 0x287   :  { %2222 = vmax.xlane.f32.xlu0 %v2221_v36  ;;  %v5767_v36 = vpop.permute.xlu0 %1000 }
 0x288   :  { %6670 = vst [vmem:[#allocation62_spill] sm:$0xff] %v5767_v36 }
 0x289   :  { %2213 = vmax.xlane.f32.xlu1 %v2212_v33  ;;  %v5771_v33 = vpop.f32.mrf.mxu1 }
 0x28a   :  { %6671 = vst [vmem:[#allocation63_spill] sm:$0xff] %v5771_v33  ;;  %v2218_v40 = vsel %vm2034_vm2, %v5771_v33, -inf }
 0x28b   :  { %2216 = vmax.xlane.f32.xlu0 %v2215_v7  ;;  %v5777_v7 = vpop.permute.xlu0 %966 }
 0x28c   :  { %6673 = vst [vmem:[#allocation65_spill] sm:$0xff] %v5777_v7 }
 0x28d   :  { %2207 = vmax.xlane.f32.xlu1 %v2206_v59 }
 0x28f   :  { %2225 = vmax.xlane.f32.xlu0 %v2224_v51 }
 0x293   :  { %2219 = vmax.xlane.f32.xlu0 %v2218_v40 }
 0x298   :  { %v2043_v63 = vpop.xlane.xlu0 %2042 }
 0x299   :  { %v2229_v59 = vsub.f32 %v5485_v35, %v2043_v63 }
 0x29a   :  { %v2037_v36 = vpop.xlane.xlu1 %2036 }
 0x29b   :  { %v2295_v55 = vmul.f32 1.442695, %v2229_v59  ;;  %v2227_v54 = vsub.f32 %v5489_v42, %v2037_v36 }
 0x29d   :  { %4612 = vpow2.f32 %v2295_v55  ;;  %v2291_v31 = vmul.f32 1.442695, %v2227_v54 }
 0x29e   :  { %v2046_v51 = vpop.xlane.xlu1 %2045  ;;  %v2040_v22 = vpop.xlane.xlu0 %2039 }
 0x29f   :  { %4614 = vpow2.f32 %v2291_v31  ;;  %v2230_v41 = vsub.f32 %v5493_v17, %v2046_v51  ;;  %v2228_v40 = vsub.f32 %v5495_v37, %v2040_v22 }
 0x2a1   :  { %v2297_v33 = vmul.f32 1.442695, %v2230_v41  ;;  %v2293_v7 = vmul.f32 1.442695, %v2228_v40 }
 0x2a2   :  { %v2055_v25 = vpop.xlane.xlu0 %2054 }
 0x2a3   :  { %4616 = vpow2.f32 %v2297_v33  ;;  %v2233_v61 = vsub.f32 %v5501_v5, %v2055_v25 }
 0x2a4   :  { %4618 = vpow2.f32 %v2293_v7 }
 0x2a5   :  { %v2303_v35 = vmul.f32 1.442695, %v2233_v61 }
 0x2a6   :  { %v2049_v63 = vpop.xlane.xlu0 %2048  ;;  %v2052_v59 = vpop.xlane.xlu1 %2051 }
 0x2a7   :  { %4620 = vpow2.f32 %v2303_v35  ;;  %v2231_v42 = vsub.f32 %v5503_v16, %v2049_v63  ;;  %v2232_v55 = vsub.f32 %v5509_v38, %v2052_v59 }
 0x2a9   :  { %v2299_v31 = vmul.f32 1.442695, %v2231_v42  ;;  %v2301_v17 = vmul.f32 1.442695, %v2232_v55 }
 0x2aa   :  { %v5788_v54 = vpop.eup %4612  ;;  %v2058_v37 = vpop.xlane.xlu0 %2057 }
 0x2ab   :  { %v2067_v41 = vpop.xlane.xlu1 %2066  ;;  %4622 = vpow2.f32 %v2299_v31  ;;  %v2234_v22 = vsub.f32 %v5507_v13, %v2058_v37  ;;  %v2425_v61 = vsel %vm2034_vm2, %v5788_v54, 0.0 }
 0x2ac   :  { %v2237_v5 = vsub.f32 %v5515_v45, %v2067_v41  ;;  %v5794_v25 = vpop.eup %4614  ;;  %2426 = vadd.xlane.f32.xlu1 %v2425_v61  ;;  %4624 = vpow2.f32 %v2301_v17 }
 0x2ad   :  { %v2305_v16 = vmul.f32 1.442695, %v2234_v22  ;;  %v2419_v7 = vsel %vm2034_vm2, %v5794_v25, 0.0 }
 0x2ae   :  { %v2311_v36 = vmul.f32 1.442695, %v2237_v5 }
 0x2af   :  { %v2091_v38 = vpop.xlane.xlu1 %2090  ;;  %4626 = vpow2.f32 %v2305_v16 }
 0x2b0   :  { %v2245_v33 = vsub.f32 %v5523_v52, %v2091_v38  ;;  %v5799_v51 = vpop.eup %4616  ;;  %4628 = vpow2.f32 %v2311_v36  ;;  %v2079_v13 = vpop.xlane.xlu0 %2078  ;;  %2420 = vadd.xlane.f32.xlu1 %v2419_v7 }
 0x2b1   :  { %v2241_v40 = vsub.f32 %v5531_v47, %v2079_v13  ;;  %v5802_v63 = vpop.eup %4618  ;;  %v2428_v52 = vsel %vm2034_vm2, %v5799_v51, 0.0 }
 0x2b2   :  { %v2327_v45 = vmul.f32 1.442695, %v2245_v33  ;;  %v2422_v5 = vsel %vm2034_vm2, %v5802_v63, 0.0 }
 0x2b3   :  { %v2061_v35 = vpop.xlane.xlu1 %2060  ;;  %v2319_v59 = vmul.f32 1.442695, %v2241_v40 }
 0x2b4   :  { %4630 = vpow2.f32 %v2327_v45  ;;  %v2235_v42 = vsub.f32 %v5517_v24, %v2061_v35  ;;  %v5807_v55 = vpop.eup %4620  ;;  %v2073_v31 = vpop.xlane.xlu0 %2072  ;;  %2429 = vadd.xlane.f32.xlu1 %v2428_v52 }
 0x2b5   :  { %4632 = vpow2.f32 %v2319_v59  ;;  %v2239_v37 = vsub.f32 %v5535_v30, %v2073_v31  ;;  %v2437_v47 = vsel %vm2034_vm2, %v5807_v55, 0.0 }
 0x2b6   :  { %v2307_v17 = vmul.f32 1.442695, %v2235_v42  ;;  %2438 = vadd.xlane.f32.xlu0 %v2437_v47 }
 0x2b7   :  { %v2085_v41 = vpop.xlane.xlu1 %2084  ;;  %v2315_v22 = vmul.f32 1.442695, %v2239_v37 }
 0x2b8   :  { %4634 = vpow2.f32 %v2307_v17  ;;  %v2243_v24 = vsub.f32 %v5539_v39, %v2085_v41  ;;  %v5815_v61 = vpop.eup %4622  ;;  %v2082_v16 = vpop.xlane.xlu0 %2081  ;;  %2423 = vadd.xlane.f32.xlu1 %v2422_v5 }
 0x2b9   :  { %4636 = vpow2.f32 %v2315_v22  ;;  %v2242_v30 = vsub.f32 %v5543_v53, %v2082_v16  ;;  %v2431_v38 = vsel %vm2034_vm2, %v5815_v61, 0.0  ;;  %v5820_v7 = vpop.eup %4624 }
 0x2ba   :  { %v2323_v36 = vmul.f32 1.442695, %v2243_v24  ;;  %2432 = vadd.xlane.f32.xlu0 %v2431_v38  ;;  %v2434_v41 = vsel %vm2034_vm2, %v5820_v7, 0.0 }
 0x2bb   :  { %v2070_v33 = vpop.xlane.xlu1 %2069  ;;  %v2321_v39 = vmul.f32 1.442695, %v2242_v30 }
 0x2bc   :  { %4638 = vpow2.f32 %v2323_v36  ;;  %v2238_v13 = vsub.f32 %v5525_v11, %v2070_v33  ;;  %v5823_v45 = vpop.eup %4626  ;;  %v2076_v40 = vpop.xlane.xlu0 %2075 }
 0x2bd   :  { %v5825_v35 = vpop.eup %4628  ;;  %4640 = vpow2.f32 %v2321_v39  ;;  %v2240_v53 = vsub.f32 %v5549_v43, %v2076_v40  ;;  %v2440_v42 = vsel %vm2034_vm2, %v5823_v45, 0.0 }
 0x2be   :  { %v2313_v59 = vmul.f32 1.442695, %v2238_v13  ;;  %v2449_v31 = vsel %vm2034_vm2, %v5825_v35, 0.0  ;;  %2441 = vadd.xlane.f32.xlu0 %v2440_v42 }
 0x2bf   :  { %v2094_v52 = vpop.xlane.xlu1 %2093  ;;  %v2317_v17 = vmul.f32 1.442695, %v2240_v53  ;;  %2450 = vadd.xlane.f32.xlu1 %v2449_v31 }
 0x2c0   :  { %4642 = vpow2.f32 %v2313_v59  ;;  %v2246_v11 = vsub.f32 %v5553_v4, %v2094_v52  ;;  %v2103_v47 = vpop.xlane.xlu0 %2102 }
 0x2c1   :  { %v5833_v37 = vpop.eup %4630  ;;  %4644 = vpow2.f32 %v2317_v17  ;;  %v2249_v22 = vsub.f32 %v5557_v32, %v2103_v47 }
 0x2c2   :  { %v2329_v43 = vmul.f32 1.442695, %v2246_v11  ;;  %v2473_v24 = vsel %vm2034_vm2, %v5833_v37, 0.0  ;;  %v5840_v5 = vpop.eup %4632  ;;  %2435 = vadd.xlane.f32.xlu0 %v2434_v41 }
 0x2c3   :  { %v2064_v16 = vpop.xlane.xlu1 %2063  ;;  %v2335_v4 = vmul.f32 1.442695, %v2249_v22  ;;  %2474 = vadd.xlane.f32.xlu1 %v2473_v24  ;;  %v2461_v33 = vsel %vm2034_vm2, %v5840_v5, 0.0 }
 0x2c4   :  { %4646 = vpow2.f32 %v2329_v43  ;;  %v2236_v36 = vsub.f32 %v5527_v23, %v2064_v16  ;;  %v2097_v38 = vpop.xlane.xlu0 %2096 }
 0x2c5   :  { %v5843_v30 = vpop.eup %4634  ;;  %4648 = vpow2.f32 %v2335_v4  ;;  %v2247_v39 = vsub.f32 %v5563_v57, %v2097_v38 }
 0x2c6   :  { %6675 = vst [vmem:[#allocation67_spill] sm:$0xff] %v5843_v30  ;;  %v2309_v32 = vmul.f32 1.442695, %v2236_v36  ;;  %v2443_v13 = vsel %vm2034_vm2, %v5843_v30, 0.0  ;;  %v5850_v40 = vpop.eup %4636  ;;  %2462 = vadd.xlane.f32.xlu0 %v2461_v33 }
 0x2c7   :  { %6676 = vst [vmem:[#allocation68_spill] sm:$0xff] %v5850_v40  ;;  %v2088_v59 = vpop.xlane.xlu1 %2087  ;;  %v2331_v23 = vmul.f32 1.442695, %v2247_v39  ;;  %2444 = vadd.xlane.f32.xlu1 %v2443_v13  ;;  %v2455_v31 = vsel %vm2034_vm2, %v5850_v40, 0.0 }
 0x2c8   :  { %4650 = vpow2.f32 %v2309_v32  ;;  %v2244_v53 = vsub.f32 %v5567_v20, %v2088_v59  ;;  %v2106_v52 = vpop.xlane.xlu0 %2105 }
 0x2c9   :  { %v5853_v42 = vpop.eup %4638  ;;  %4652 = vpow2.f32 %v2331_v23  ;;  %v2250_v17 = vsub.f32 %v5571_v46, %v2106_v52 }
 0x2ca   :  { %6677 = vst [vmem:[#allocation69_spill] sm:$0xff] %v5853_v42  ;;  %v2325_v57 = vmul.f32 1.442695, %v2244_v53  ;;  %v2467_v11 = vsel %vm2034_vm2, %v5853_v42, 0.0  ;;  %v5860_v47 = vpop.eup %4640  ;;  %2456 = vadd.xlane.f32.xlu0 %v2455_v31 }
 0x2cb   :  { %v2115_v41 = vpop.xlane.xlu1 %2114  ;;  %v2337_v20 = vmul.f32 1.442695, %v2250_v17  ;;  %2468 = vadd.xlane.f32.xlu1 %v2467_v11  ;;  %v2464_v16 = vsel %vm2034_vm2, %v5860_v47, 0.0 }
 0x2cc   :  { %4654 = vpow2.f32 %v2325_v57  ;;  %v2253_v43 = vsub.f32 %v5575_v9, %v2115_v41  ;;  %v2100_v24 = vpop.xlane.xlu0 %2099 }
 0x2cd   :  { %v5863_v22 = vpop.eup %4642  ;;  %4656 = vpow2.f32 %v2337_v20  ;;  %v2248_v4 = vsub.f32 %v5579_v56, %v2100_v24 }
 0x2ce   :  { %v2343_v46 = vmul.f32 1.442695, %v2253_v43  ;;  %v2452_v36 = vsel %vm2034_vm2, %v5863_v22, 0.0  ;;  %v5870_v38 = vpop.eup %4644  ;;  %2465 = vadd.xlane.f32.xlu0 %v2464_v16 }
 0x2cf   :  { %v2109_v33 = vpop.xlane.xlu1 %2108  ;;  %v2333_v9 = vmul.f32 1.442695, %v2248_v4  ;;  %2453 = vadd.xlane.f32.xlu1 %v2452_v36  ;;  %v2458_v59 = vsel %vm2034_vm2, %v5870_v38, 0.0 }
 0x2d0   :  { %4658 = vpow2.f32 %v2343_v46  ;;  %v2251_v32 = vsub.f32 %v5583_v60, %v2109_v33  ;;  %v2127_v13 = vpop.xlane.xlu0 %2126 }
 0x2d1   :  { %v5873_v39 = vpop.eup %4646  ;;  %4660 = vpow2.f32 %v2333_v9  ;;  %v2257_v23 = vsub.f32 %v5587_v2, %v2127_v13 }
 0x2d2   :  { %v2339_v56 = vmul.f32 1.442695, %v2251_v32  ;;  %v2476_v53 = vsel %vm2034_vm2, %v5873_v39, 0.0  ;;  %v5880_v52 = vpop.eup %4648  ;;  %2459 = vadd.xlane.f32.xlu0 %v2458_v59 }
 0x2d3   :  { %v2118_v31 = vpop.xlane.xlu1 %2117  ;;  %v2351_v60 = vmul.f32 1.442695, %v2257_v23  ;;  %2477 = vadd.xlane.f32.xlu1 %v2476_v53  ;;  %v2485_v41 = vsel %vm2034_vm2, %v5880_v52, 0.0 }
 0x2d4   :  { %4662 = vpow2.f32 %v2339_v56  ;;  %v2254_v57 = vsub.f32 %v5591_v0, %v2118_v31  ;;  %v2121_v11 = vpop.xlane.xlu0 %2120 }
 0x2d5   :  { %v5883_v17 = vpop.eup %4650  ;;  %4664 = vpow2.f32 %v2351_v60  ;;  %v2255_v20 = vsub.f32 %v5595_v21, %v2121_v11 }
 0x2d6   :  { %v2345_v2 = vmul.f32 1.442695, %v2254_v57  ;;  %v2446_v43 = vsel %vm2034_vm2, %v5883_v17, 0.0  ;;  %v5890_v24 = vpop.eup %4652  ;;  %2486 = vadd.xlane.f32.xlu0 %v2485_v41 }
 0x2d7   :  { %6678 = vst [vmem:[#allocation70_spill] sm:$0xff] %v5890_v24  ;;  %v2112_v16 = vpop.xlane.xlu1 %2111  ;;  %v2347_v0 = vmul.f32 1.442695, %v2255_v20  ;;  %2447 = vadd.xlane.f32.xlu1 %v2446_v43  ;;  %v2479_v9 = vsel %vm2034_vm2, %v5890_v24, 0.0 }
 0x2d8   :  { %4666 = vpow2.f32 %v2345_v2  ;;  %v2252_v46 = vsub.f32 %v5599_v49, %v2112_v16  ;;  %v5895_v36 = vpop.xlane.xlu0 %2129 }
 0x2d9   :  { %v5893_v4 = vpop.eup %4654  ;;  %4668 = vpow2.f32 %v2347_v0 }
 0x2da   :  { %v2341_v33 = vmul.f32 1.442695, %v2252_v46  ;;  %v2470_v21 = vsel %vm2034_vm2, %v5893_v4, 0.0  ;;  %v5901_v32 = vpop.eup %4656  ;;  %2480 = vadd.xlane.f32.xlu0 %v2479_v9 }
 0x2db   :  { %v2139_v13 = vpop.xlane.xlu1 %2138  ;;  %2471 = vadd.xlane.f32.xlu1 %v2470_v21  ;;  %v2488_v31 = vsel %vm2034_vm2, %v5901_v32, 0.0 }
 0x2dc   :  { %4670 = vpow2.f32 %v2341_v33  ;;  %v2261_v49 = vsub.f32 %v5607_v14, %v2139_v13  ;;  %v5906_v56 = vpop.xlane.xlu0 %2123 }
 0x2dd   :  { %v5904_v59 = vpop.eup %4658 }
 0x2de   :  { %v2359_v23 = vmul.f32 1.442695, %v2261_v49  ;;  %v2497_v53 = vsel %vm2034_vm2, %v5904_v59, 0.0  ;;  %v5912_v60 = vpop.eup %4660  ;;  %2489 = vadd.xlane.f32.xlu0 %v2488_v31 }
 0x2df   :  { %v2133_v57 = vpop.xlane.xlu1 %2132  ;;  %2498 = vadd.xlane.f32.xlu1 %v2497_v53  ;;  %v2482_v43 = vsel %vm2034_vm2, %v5912_v60, 0.0 }
 0x2e0   :  { %4672 = vpow2.f32 %v2359_v23  ;;  %v2259_v11 = vsub.f32 %v5615_v19, %v2133_v57  ;;  %v2151_v41 = vpop.xlane.xlu0 %2150 }
 0x2e1   :  { %v5915_v14 = vpop.eup %4662 }
 0x2e2   :  { %6679 = vst [vmem:[#allocation71_spill] sm:$0xff] %v5915_v14  ;;  %v2355_v2 = vmul.f32 1.442695, %v2259_v11  ;;  %v2491_v20 = vsel %vm2034_vm2, %v5915_v14, 0.0  ;;  %v5921_v16 = vpop.eup %4664  ;;  %2483 = vadd.xlane.f32.xlu0 %v2482_v43 }
 0x2e3   :  { %v2142_v0 = vpop.xlane.xlu1 %2141  ;;  %2492 = vadd.xlane.f32.xlu1 %v2491_v20  ;;  %v2509_v13 = vsel %vm2034_vm2, %v5921_v16, 0.0 }
 0x2e4   :  { %4674 = vpow2.f32 %v2355_v2  ;;  %v2262_v46 = vsub.f32 %v5623_v50, %v2142_v0  ;;  %v5926_v33 = vpop.xlane.xlu0 %2144 }
 0x2e5   :  { %v5924_v19 = vpop.eup %4666 }
 0x2e6   :  { %v2361_v21 = vmul.f32 1.442695, %v2262_v46  ;;  %v2500_v9 = vsel %vm2034_vm2, %v5924_v19, 0.0  ;;  %v5932_v49 = vpop.eup %4668  ;;  %2510 = vadd.xlane.f32.xlu0 %v2509_v13  ;;  %v2258_v46 = vsub.f32 %v5603_v8, %v5895_v36 }
 0x2e7   :  { %6680 = vst [vmem:[#allocation72_spill] sm:$0xff] %v5932_v49  ;;  %v2136_v23 = vpop.xlane.xlu1 %2135  ;;  %2501 = vadd.xlane.f32.xlu1 %v2500_v9  ;;  %v2503_v2 = vsel %vm2034_vm2, %v5932_v49, 0.0 }
 0x2e8   :  { %4676 = vpow2.f32 %v2361_v21  ;;  %v2260_v53 = vsub.f32 %v5631_v26, %v2136_v23  ;;  %v5937_v31 = vpop.xlane.xlu0 %2153 }
 0x2e9   :  { %v5935_v50 = vpop.eup %4670 }
 0x2ea   :  { %v2357_v57 = vmul.f32 1.442695, %v2260_v53  ;;  %v2494_v11 = vsel %vm2034_vm2, %v5935_v50, 0.0  ;;  %2504 = vadd.xlane.f32.xlu0 %v2503_v2 }
 0x2eb   :  { %v2163_v20 = vpop.xlane.xlu1 %2162  ;;  %2495 = vadd.xlane.f32.xlu1 %v2494_v11  ;;  %v2256_v11 = vsub.f32 %v5611_v58, %v5906_v56 }
 0x2ec   :  { %4678 = vpow2.f32 %v2357_v57  ;;  %v2269_v43 = vsub.f32 %v5639_v62, %v2163_v20  ;;  %v5946_v26 = vpop.xlane.xlu0 %2147  ;;  %v2353_v57 = vmul.f32 1.442695, %v2258_v46 }
 0x2ed   :  { %v5944_v0 = vpop.eup %4672  ;;  %v2349_v46 = vmul.f32 1.442695, %v2256_v11 }
 0x2ee   :  { %v2375_v21 = vmul.f32 1.442695, %v2269_v43  ;;  %v2521_v9 = vsel %vm2034_vm2, %v5944_v0, 0.0 }
 0x2ef   :  { %v2157_v13 = vpop.xlane.xlu1 %2156  ;;  %2522 = vadd.xlane.f32.xlu1 %v2521_v9 }
 0x2f0   :  { %4680 = vpow2.f32 %v2375_v21  ;;  %v2267_v23 = vsub.f32 %v5649_v27, %v2157_v13  ;;  %v5955_v62 = vpop.xlane.xlu0 %2174  ;;  %v2265_v27 = vsub.f32 %v5619_v48, %v2151_v41  ;;  %v2263_v48 = vsub.f32 %v5627_v1, %v5926_v33 }
 0x2f1   :  { %v5953_v53 = vpop.eup %4674 }
 0x2f2   :  { %6681 = vst [vmem:[#allocation73_spill] sm:$0xff] %v5953_v53  ;;  %v2371_v2 = vmul.f32 1.442695, %v2267_v23  ;;  %v2515_v8 = vsel %vm2034_vm2, %v5953_v53, 0.0 }
 0x2f3   :  { %v2166_v36 = vpop.xlane.xlu1 %2165  ;;  %2516 = vadd.xlane.f32.xlu1 %v2515_v8 }
 0x2f4   :  { %4682 = vpow2.f32 %v2371_v2  ;;  %v2270_v20 = vsub.f32 %v5659_v6, %v2166_v36  ;;  %v5965_v21 = vpop.xlane.xlu0 %2168  ;;  %v2367_v6 = vmul.f32 1.442695, %v2265_v27  ;;  %v2266_v27 = vsub.f32 %v5635_v44, %v5937_v31 }
 0x2f5   :  { %v5962_v43 = vpop.eup %4676  ;;  %4684 = vpow2.f32 %v2353_v57 }
 0x2f6   :  { %v2377_v9 = vmul.f32 1.442695, %v2270_v20  ;;  %v2524_v58 = vsel %vm2034_vm2, %v5962_v43, 0.0  ;;  %v2363_v20 = vmul.f32 1.442695, %v2263_v48 }
 0x2f7   :  { %v2160_v56 = vpop.xlane.xlu1 %2159  ;;  %2525 = vadd.xlane.f32.xlu1 %v2524_v58  ;;  %v2264_v58 = vsub.f32 %v5643_v28, %v5946_v26  ;;  %v2273_v28 = vsub.f32 %v5655_v29, %v5955_v62  ;;  %v2271_v62 = vsub.f32 %v5665_v15, %v5965_v21  ;;  %v6684_v21 = vld [vmem:[#allocation37_spill] sm:$0xff] }
 0x2f8   :  { %4686 = vpow2.f32 %v2377_v9  ;;  %v2268_v13 = vsub.f32 %v5671_v18, %v2160_v56  ;;  %v5972_v2 = vpop.xlane.xlu0 %2177 }
 0x2f9   :  { %v5970_v23 = vpop.eup %4678  ;;  %4688 = vpow2.f32 %v2349_v46  ;;  %v2383_v29 = vmul.f32 1.442695, %v2273_v28  ;;  %v2379_v15 = vmul.f32 1.442695, %v2271_v62 }
 0x2fa   :  { %v2373_v41 = vmul.f32 1.442695, %v2268_v13  ;;  %v2518_v57 = vsel %vm2034_vm2, %v5970_v23, 0.0  ;;  %v2369_v13 = vmul.f32 1.442695, %v2266_v27 }
 0x2fb   :  { %v2187_v11 = vpop.xlane.xlu1 %2186  ;;  %2519 = vadd.xlane.f32.xlu1 %v2518_v57  ;;  %v2365_v57 = vmul.f32 1.442695, %v2264_v58 }
 0x2fc   :  { %4690 = vpow2.f32 %v2373_v41  ;;  %v2277_v8 = vsub.f32 %v5681_v3, %v2187_v11  ;;  %v5981_v36 = vpop.xlane.xlu0 %2171 }
 0x2fd   :  { %v5979_v18 = vpop.eup %4680  ;;  %4692 = vpow2.f32 %v2367_v6 }
 0x2fe   :  { %v2391_v46 = vmul.f32 1.442695, %v2277_v8  ;;  %v2545_v1 = vsel %vm2034_vm2, %v5979_v18, 0.0 }
 0x2ff   :  { %v2181_v33 = vpop.xlane.xlu1 %2180  ;;  %2546 = vadd.xlane.f32.xlu1 %v2545_v1 }
 0x300   :  { %4694 = vpow2.f32 %v2391_v46  ;;  %v2275_v9 = vsub.f32 %v5691_v12, %v2181_v33  ;;  %v5992_v56 = vpop.xlane.xlu0 %2198 }
 0x301   :  { %v5988_v3 = vpop.eup %4682  ;;  %4696 = vpow2.f32 %v2363_v20 }
 0x302   :  { %6682 = vst [vmem:[#allocation74_spill] sm:$0xff] %v5988_v3  ;;  %v2387_v6 = vmul.f32 1.442695, %v2275_v9  ;;  %v2539_v44 = vsel %vm2034_vm2, %v5988_v3, 0.0  ;;  %v5996_v31 = vpop.eup %4684  ;;  %v6691_v3 = vld [vmem:[#allocation57_spill] sm:$0xff] }
 0x303   :  { %v2190_v48 = vpop.xlane.xlu1 %2189  ;;  %2540 = vadd.xlane.f32.xlu0 %v2539_v44  ;;  %v2512_v20 = vsel %vm2034_vm2, %v5996_v31, 0.0 }
 0x304   :  { %4698 = vpow2.f32 %v2387_v6  ;;  %v2278_v12 = vsub.f32 %v5703_v10, %v2190_v48  ;;  %v6003_v26 = vpop.xlane.xlu0 %2192 }
 0x305   :  { %v5999_v41 = vpop.eup %4686  ;;  %4700 = vpow2.f32 %v2369_v13 }
 0x306   :  { %v2393_v11 = vmul.f32 1.442695, %v2278_v12  ;;  %v2548_v8 = vsel %vm2034_vm2, %v5999_v41, 0.0  ;;  %v6009_v27 = vpop.eup %4688 }
 0x307   :  { %v2184_v46 = vpop.xlane.xlu1 %2183  ;;  %2549 = vadd.xlane.f32.xlu1 %v2548_v8  ;;  %2513 = vadd.xlane.f32.xlu0 %v2512_v20  ;;  %v2506_v6 = vsel %vm2034_vm2, %v6009_v27, 0.0 }
 0x308   :  { %4702 = vpow2.f32 %v2393_v11  ;;  %v2276_v10 = vsub.f32 %v5713_v34, %v2184_v46  ;;  %v6016_v33 = vpop.xlane.xlu0 %2201  ;;  %v6683_v34 = vld [vmem:[#allocation48_spill] sm:$0xff] }
 0x309   :  { %v6012_v1 = vpop.eup %4690  ;;  %4704 = vpow2.f32 %v2365_v57  ;;  %v2274_v57 = vsub.f32 %v6684_v21, %v5972_v2 }
 0x30a   :  { %v6018_v9 = vpop.eup %4692  ;;  %v2389_v58 = vmul.f32 1.442695, %v2276_v10  ;;  %v2542_v13 = vsel %vm2034_vm2, %v6012_v1, 0.0 }
 0x30b   :  { %v2211_v44 = vpop.xlane.xlu1 %2210  ;;  %2543 = vadd.xlane.f32.xlu1 %v2542_v13  ;;  %2507 = vadd.xlane.f32.xlu0 %v2506_v6  ;;  %v2533_v20 = vsel %vm2034_vm2, %v6018_v9, 0.0  ;;  %v2385_v2 = vmul.f32 1.442695, %v2274_v57  ;;  %v6688_v13 = vld [vmem:[#allocation40_spill] sm:$0xff] }
 0x30c   :  { %4706 = vpow2.f32 %v2389_v58  ;;  %v2285_v48 = vsub.f32 %v6683_v34, %v2211_v44  ;;  %v6029_v28 = vpop.xlane.xlu0 %2195  ;;  %v2272_v6 = vsub.f32 %v6688_v13, %v5981_v36 }
 0x30d   :  { %v6025_v12 = vpop.eup %4694  ;;  %4708 = vpow2.f32 %v2383_v29  ;;  %v6686_v29 = vld [vmem:[#allocation52_spill] sm:$0xff] }
 0x30e   :  { %v2407_v11 = vmul.f32 1.442695, %v2285_v48  ;;  %v2569_v8 = vsel %vm2034_vm2, %v6025_v12, 0.0  ;;  %v6035_v46 = vpop.eup %4696  ;;  %v2381_v36 = vmul.f32 1.442695, %v2272_v6 }
 0x30f   :  { %6685 = vst [vmem:[#allocation48_spill] sm:$0xff] %v6035_v46  ;;  %v2205_v10 = vpop.xlane.xlu1 %2204  ;;  %2570 = vadd.xlane.f32.xlu1 %v2569_v8  ;;  %2534 = vadd.xlane.f32.xlu0 %v2533_v20  ;;  %v2527_v21 = vsel %vm2034_vm2, %v6035_v46, 0.0 }
 0x310   :  { %4710 = vpow2.f32 %v2407_v11  ;;  %v2283_v62 = vsub.f32 %v6686_v29, %v2205_v10  ;;  %v6042_v44 = vpop.xlane.xlu0 %2222  ;;  %v6690_v10 = vld [vmem:[#allocation42_spill] sm:$0xff] }
 0x311   :  { %v6038_v58 = vpop.eup %4698  ;;  %4712 = vpow2.f32 %v2379_v15  ;;  %v6689_v15 = vld [vmem:[#allocation55_spill] sm:$0xff]  ;;  %v2281_v29 = vsub.f32 %v6690_v10, %v5992_v56 }
 0x312   :  { %6687 = vst [vmem:[#allocation37_spill] sm:$0xff] %v6038_v58  ;;  %v2403_v34 = vmul.f32 1.442695, %v2283_v62  ;;  %v2563_v48 = vsel %vm2034_vm2, %v6038_v58, 0.0  ;;  %v6048_v8 = vpop.eup %4700 }
 0x313   :  { %v2214_v11 = vpop.xlane.xlu1 %2213  ;;  %2564 = vadd.xlane.f32.xlu1 %v2563_v48  ;;  %2528 = vadd.xlane.f32.xlu0 %v2527_v21  ;;  %v2399_v56 = vmul.f32 1.442695, %v2281_v29 }
 0x314   :  { %4714 = vpow2.f32 %v2403_v34  ;;  %v2286_v57 = vsub.f32 %v6689_v15, %v2214_v11  ;;  %v2217_v62 = vpop.xlane.xlu0 %2216  ;;  %v2536_v34 = vsel %vm2034_vm2, %v6048_v8, 0.0 }
 0x315   :  { %v6051_v20 = vpop.eup %4702  ;;  %4716 = vpow2.f32 %v2385_v2  ;;  %v2287_v46 = vsub.f32 %v6691_v3, %v2217_v62  ;;  %v6692_v2 = vld [vmem:[#allocation58_spill] sm:$0xff] }
 0x316   :  { %v6055_v13 = vpop.eup %4704  ;;  %v2409_v58 = vmul.f32 1.442695, %v2286_v57  ;;  %v2572_v48 = vsel %vm2034_vm2, %v6051_v20, 0.0  ;;  %v6693_v57 = vld [vmem:[#allocation44_spill] sm:$0xff] }
 0x317   :  { %2573 = vadd.xlane.f32.xlu1 %v2572_v48  ;;  %v2208_v21 = vpop.xlane.xlu1 %2207  ;;  %2537 = vadd.xlane.f32.xlu0 %v2536_v34  ;;  %v2530_v15 = vsel %vm2034_vm2, %v6055_v13, 0.0  ;;  %v2279_v10 = vsub.f32 %v6693_v57, %v6003_v26  ;;  %v2411_v62 = vmul.f32 1.442695, %v2287_v46 }
 0x318   :  { %4718 = vpow2.f32 %v2409_v58  ;;  %v2284_v6 = vsub.f32 %v6692_v2, %v2208_v21  ;;  %v6695_v21 = vld [vmem:[#allocation47_spill] sm:$0xff] }
 0x319   :  { %v6063_v11 = vpop.eup %4706  ;;  %4720 = vpow2.f32 %v2381_v36  ;;  %v2395_v34 = vmul.f32 1.442695, %v2279_v10  ;;  %v2282_v26 = vsub.f32 %v6695_v21, %v6016_v33 }
 0x31a   :  { %v6067_v3 = vpop.eup %4708  ;;  %v2405_v53 = vmul.f32 1.442695, %v2284_v6  ;;  %v2566_v48 = vsel %vm2034_vm2, %v6063_v11, 0.0 }
 0x31b   :  { %2567 = vadd.xlane.f32.xlu1 %v2566_v48  ;;  %2531 = vadd.xlane.f32.xlu0 %v2530_v15  ;;  %v2557_v36 = vsel %vm2034_vm2, %v6067_v3, 0.0  ;;  %v6697_v15 = vld [vmem:[#allocation50_spill] sm:$0xff] }
 0x31c   :  { %4722 = vpow2.f32 %v2405_v53  ;;  %v2280_v57 = vsub.f32 %v6697_v15, %v6029_v28 }
 0x31d   :  { %v6073_v58 = vpop.eup %4710  ;;  %4724 = vpow2.f32 %v2399_v56  ;;  %v2401_v56 = vmul.f32 1.442695, %v2282_v26 }
 0x31e   :  { %v6077_v29 = vpop.eup %4712  ;;  %4726 = vpow2.f32 %v2411_v62  ;;  %v2593_v46 = vsel %vm2034_vm2, %v6073_v58, 0.0  ;;  %v2226_v62 = vpop.xlane.xlu0 %2225  ;;  %v2397_v21 = vmul.f32 1.442695, %v2280_v57 }
 0x31f   :  { %6694 = vst [vmem:[#allocation52_spill] sm:$0xff] %v6077_v29  ;;  %2594 = vadd.xlane.f32.xlu1 %v2593_v46  ;;  %2558 = vadd.xlane.f32.xlu0 %v2557_v36  ;;  %v2551_v53 = vsel %vm2034_vm2, %v6077_v29, 0.0  ;;  %4728 = vpow2.f32 %v2395_v34  ;;  %v6699_v34 = vld [vmem:[#allocation53_spill] sm:$0xff]  ;;  %v6702_v29 = vld [vmem:[#allocation63_spill] sm:$0xff] }
 0x320   :  { %4730 = vpow2.f32 %v2401_v56  ;;  %v2289_v26 = vsub.f32 %v6699_v34, %v6042_v44 }
 0x321   :  { %v6083_v2 = vpop.eup %4714  ;;  %4732 = vpow2.f32 %v2397_v21 }
 0x322   :  { %6696 = vst [vmem:[#allocation40_spill] sm:$0xff] %v6083_v2  ;;  %v6087_v6 = vpop.eup %4716  ;;  %v2587_v33 = vsel %vm2034_vm2, %v6083_v2, 0.0  ;;  %v6700_v2 = vld [vmem:[#allocation60_spill] sm:$0xff]  ;;  %v2220_v34 = vpop.xlane.xlu0 %2219 }
 0x323   :  { %2552 = vadd.xlane.f32.xlu1 %v2551_v53  ;;  %2588 = vadd.xlane.f32.xlu0 %v2587_v33  ;;  %v2560_v48 = vsel %vm2034_vm2, %v6087_v6, 0.0  ;;  %v2415_v33 = vmul.f32 1.442695, %v2289_v26  ;;  %v2290_v56 = vsub.f32 %v6700_v2, %v2226_v62  ;;  %v2288_v49 = vsub.f32 %v6702_v29, %v2220_v34 }
 0x325   :  { %v6093_v10 = vpop.eup %4718  ;;  %4734 = vpow2.f32 %v2415_v33  ;;  %v2413_v2 = vmul.f32 1.442695, %v2288_v49 }
 0x326   :  { %6698 = vst [vmem:[#allocation55_spill] sm:$0xff] %v6093_v10  ;;  %v6097_v36 = vpop.eup %4720  ;;  %v2596_v28 = vsel %vm2034_vm2, %v6093_v10, 0.0 }
 0x327   :  { %2597 = vadd.xlane.f32.xlu1 %v2596_v28  ;;  %2561 = vadd.xlane.f32.xlu0 %v2560_v48  ;;  %v2554_v53 = vsel %vm2034_vm2, %v6097_v36, 0.0  ;;  %v2417_v28 = vmul.f32 1.442695, %v2290_v56 }
 0x329   :  { %v6103_v46 = vpop.eup %4722  ;;  %4736 = vpow2.f32 %v2417_v28 }
 0x32a   :  { %v6107_v15 = vpop.eup %4724  ;;  %v2590_v57 = vsel %vm2034_vm2, %v6103_v46, 0.0  ;;  %4738 = vpow2.f32 %v2413_v2 }
 0x32b   :  { %v6112_v44 = vpop.eup %4726  ;;  %2591 = vadd.xlane.f32.xlu1 %v2590_v57  ;;  %2555 = vadd.xlane.f32.xlu0 %v2554_v53  ;;  %v2581_v48 = vsel %vm2034_vm2, %v6107_v15, 0.0 }
 0x32c   :  { %6701 = vst [vmem:[#allocation42_spill] sm:$0xff] %v6112_v44  ;;  %v2599_v21 = vsel %vm2034_vm2, %v6112_v44, 0.0  ;;  %v6119_v26 = vpop.eup %4728 }
 0x32d   :  { %6703 = vst [vmem:[#allocation57_spill] sm:$0xff] %v6119_v26  ;;  %v2575_v62 = vsel %vm2034_vm2, %v6119_v26, 0.0  ;;  %v6123_v53 = vpop.eup %4730 }
 0x32e   :  { %v2584_v29 = vsel %vm2034_vm2, %v6123_v53, 0.0  ;;  %v6127_v56 = vpop.eup %4732 }
 0x32f   :  { %2600 = vadd.xlane.f32.xlu1 %v2599_v21  ;;  %2582 = vadd.xlane.f32.xlu0 %v2581_v48  ;;  %v2578_v34 = vsel %vm2034_vm2, %v6127_v56, 0.0 }
 0x332   :  { %v6133_v49 = vpop.eup %4734 }
 0x333   :  { %2576 = vadd.xlane.f32.xlu0 %v2575_v62  ;;  %v2605_v48 = vsel %vm2034_vm2, %v6133_v49, 0.0 }
 0x335   :  { %v2427_v33 = vpop.xlane.xlu1 %2426 }
 0x336   :  { %v6137_v28 = vpop.eup %4736  ;;  %4740 = vrcp.f32 %v2427_v33 }
 0x337   :  { %2585 = vadd.xlane.f32.xlu0 %v2584_v29  ;;  %6704 = vst [vmem:[#allocation58_spill] sm:$0xff] %v6137_v28  ;;  %v2608_v62 = vsel %vm2034_vm2, %v6137_v28, 0.0  ;;  %v6141_v29 = vpop.eup %4738 }
 0x339   :  { %v6129_v57 = vpop.xlane.xlu1 %2420 }
 0x33b   :  { %2579 = vadd.xlane.f32.xlu0 %v2578_v34  ;;  %v2602_v34 = vsel %vm2034_vm2, %v6141_v29, 0.0 }
 0x33d   :  { %v2430_v21 = vpop.xlane.xlu1 %2429 }
 0x33f   :  { %2606 = vadd.xlane.f32.xlu0 %v2605_v48  ;;  %v2439_v2 = vpop.xlane.xlu0 %2438 }
 0x340   :  { %4742 = vrcp.f32 %v2439_v2 }
 0x341   :  { %v2424_v26 = vpop.xlane.xlu1 %2423  ;;  %4744 = vrcp.f32 %v2430_v21 }
 0x343   :  { %2609 = vadd.xlane.f32.xlu0 %v2608_v62  ;;  %v6143_v44 = vpop.xlane.xlu0 %2432  ;;  %v4741_v48 = vpop.eup %4740 }
 0x344   :  { %v2677_v62 = vmul.f32 %v4741_v48, %v5788_v54 }
 0x347   :  { %2603 = vadd.xlane.f32.xlu0 %v2602_v34  ;;  %v2442_v14 = vpop.xlane.xlu0 %2441 }
 0x348   :  { %v2451_v33 = vpop.xlane.xlu1 %2450  ;;  %4746 = vrcp.f32 %v2442_v14 }
 0x349   :  { %4748 = vrcp.f32 %v2424_v26 }
 0x34b   :  { %v2436_v2 = vpop.xlane.xlu0 %2435 }
 0x34c   :  { %v2475_v24 = vpop.xlane.xlu1 %2474  ;;  %4750 = vrcp.f32 %v2436_v2 }
 0x34d   :  { %v4743_v42 = vpop.eup %4742  ;;  %4752 = vrcp.f32 %v2451_v33 }
 0x34e   :  { %v2681_v40 = vmul.f32 %v4743_v42, %v5807_v55  ;;  %v4745_v26 = vpop.eup %4744 }
 0x34f   :  { %v2463_v30 = vpop.xlane.xlu0 %2462  ;;  %v2678_v55 = vmul.f32 %v4745_v26, %v5799_v51 }
 0x350   :  { %v6149_v10 = vpop.xlane.xlu1 %2444  ;;  %4754 = vrcp.f32 %v2463_v30  ;;  %v4456_v34 = vpack.i.bf16 %v2681_v40, %v2677_v62  ;;  %v6706_v30 = vmov 0.0  }
 0x351   :  { %4307 = vmatprep.mubr.msk.bf16.mxu0 %vm4894_vm3, %v6706_v30  ;;  %4315 = vmatprep.mubr.msk.bf16.mxu1 %vm4894_vm3, %v6706_v30 }
 0x352   :  { %4457 = vrot.lane.b32.xlu1 %v4456_v34, %s4893_s8 }
 0x353   :  { %v6152_v14 = vpop.xlane.xlu0 %2456 }
 0x354   :  { %v6154_v21 = vpop.xlane.xlu1 %2468 }
 0x355   :  { %6705 = vst [vmem:[#allocation44_spill] sm:$0xff] %v6154_v21  ;;  %v4747_v2 = vpop.eup %4746 }
 0x356   :  { %v2682_v33 = vmul.f32 %v4747_v2, %v5823_v45  ;;  %v4749_v28 = vpop.eup %4748 }
 0x357   :  { %v2466_v54 = vpop.xlane.xlu0 %2465  ;;  %v2676_v62 = vmul.f32 %v4749_v28, %v5802_v63 }
 0x358   :  { %v2454_v48 = vpop.xlane.xlu1 %2453  ;;  %4756 = vrcp.f32 %v2466_v54  ;;  %v4461_v40 = vpack.i.bf16 %v2682_v33, %v2678_v55 }
 0x359   :  { %v4751_v42 = vpop.eup %4750  ;;  %4758 = vrcp.f32 %v2454_v48 }
 0x35a   :  { %v2680_v45 = vmul.f32 %v4751_v42, %v5820_v7  ;;  %v4753_v34 = vpop.eup %4752 }
 0x35b   :  { %v2460_v2 = vpop.xlane.xlu0 %2459  ;;  %v2685_v54 = vmul.f32 %v4753_v34, %v5825_v35 }
 0x35c   :  { %v2478_v21 = vpop.xlane.xlu1 %2477  ;;  %v4466_v51 = vpack.i.bf16 %v2680_v45, %v2676_v62  ;;  %4760 = vrcp.f32 %v2460_v2 }
 0x35d   :  { %4462 = vrot.lane.b32.xlu0 %v4461_v40, %s4895_s9  ;;  %v4755_v26 = vpop.eup %4754 }
 0x35e   :  { %4467 = vrot.lane.b32.xlu1 %v4466_v51, %s4896_s10  ;;  %v2689_v48 = vmul.f32 %v4755_v26, %v5840_v5 }
 0x35f   :  { %v2487_v33 = vpop.xlane.xlu0 %2486 }
 0x360   :  { %v2448_v63 = vpop.xlane.xlu1 %2447  ;;  %4762 = vrcp.f32 %v2487_v33  ;;  %v4471_v7 = vpack.i.bf16 %v2689_v48, %v2685_v54 }
 0x361   :  { %4764 = vrcp.f32 %v2448_v63 }
 0x362   :  { %4472 = vrot.lane.b32.xlu0 %v4471_v7, %s4893_s8  ;;  %4766 = vrcp.f32 %v2475_v24 }
 0x363   :  { %v6169_v28 = vpop.xlane.xlu0 %2480  ;;  %4768 = vrcp.f32 %v2478_v21 }
 0x364   :  { %v2472_v55 = vpop.xlane.xlu1 %2471 }
 0x365   :  { %v4757_v42 = vpop.eup %4756 }
 0x366   :  { %v4759_v40 = vpop.eup %4758  ;;  %v2690_v62 = vmul.f32 %v4757_v42, %v5860_v47 }
 0x367   :  { %v2490_v35 = vpop.xlane.xlu0 %2489  ;;  %v2686_v5 = vmul.f32 %v4759_v40, %v5863_v22 }
 0x368   :  { %v2499_v45 = vpop.xlane.xlu1 %2498  ;;  %4770 = vrcp.f32 %v2490_v35 }
 0x369   :  { %v4476_v34 = vpack.i.bf16 %v2690_v62, %v2686_v5  ;;  %4772 = vrcp.f32 %v2472_v55  ;;  %v4761_v51 = vpop.eup %4760 }
 0x36a   :  { %v2688_v47 = vmul.f32 %v4761_v51, %v5870_v38 }
 0x36b   :  { %4477 = vrot.lane.b32.xlu1 %v4476_v34, %s4895_s9  ;;  %v2484_v2 = vpop.xlane.xlu0 %2483 }
 0x36c   :  { %v6174_v24 = vpop.xlane.xlu1 %2492  ;;  %4774 = vrcp.f32 %v2484_v2 }
 0x36d   :  { %v4763_v26 = vpop.eup %4762 }
 0x36e   :  { %v4765_v54 = vpop.eup %4764  ;;  %v2697_v7 = vmul.f32 %v4763_v26, %v5880_v52  ;;  %v6707_v52 = vld [vmem:[#allocation28_spill] sm:$0xff] }
 0x36f   :  { %v2511_v48 = vpop.xlane.xlu0 %2510  ;;  %v2684_v21 = vmul.f32 %v4765_v54, %v5883_v17  ;;  %v4767_v33 = vpop.eup %4766 }
 0x370   :  { %v2502_v22 = vpop.xlane.xlu1 %2501  ;;  %4776 = vrcp.f32 %v2511_v48  ;;  %v4769_v55 = vpop.eup %4768  ;;  %v2693_v42 = vmul.f32 %v4767_v33, %v5833_v37 }
 0x371   :  { %v4481_v63 = vpack.i.bf16 %v2688_v47, %v2684_v21  ;;  %4778 = vrcp.f32 %v2499_v45  ;;  %v2694_v5 = vmul.f32 %v4769_v55, %v5873_v39  ;;  %v6186_v45 = vpack.c.bf16 %v6707_v52, %v6707_v52  ;;  %v6708_v21 = vld [vmem:[#allocation26_spill] sm:$0xff] }
 0x372   :  { %v4486_v35 = vpack.i.bf16 %v2697_v7, %v2693_v42  ;;  %v6198_v47 = vpack.c.bf16 %v6708_v21, %v6708_v21  ;;  %4780 = vrcp.f32 %v2502_v22 }
 0x373   :  { %4482 = vrot.lane.b32.xlu1 %v4481_v63, %s4896_s10  ;;  %v6205_v55 = vpop.xlane.xlu0 %2504 }
 0x374   :  { %v2496_v40 = vpop.xlane.xlu1 %2495 }
 0x375   :  { %v4771_v62 = vpop.eup %4770 }
 0x376   :  { %v2698_v17 = vmul.f32 %v4771_v62, %v5901_v32  ;;  %v4773_v38 = vpop.eup %4772 }
 0x377   :  { %4487 = vrot.lane.b32.xlu1 %v4486_v35, %s4893_s8  ;;  %v2692_v37 = vmul.f32 %v4773_v38, %v5893_v4 }
 0x378   :  { %v2523_v34 = vpop.xlane.xlu1 %2522  ;;  %v4491_v2 = vpack.i.bf16 %v2698_v17, %v2694_v5 }
 0x379   :  { %v4775_v51 = vpop.eup %4774 }
 0x37a   :  { %4492 = vrot.lane.b32.xlu0 %v4491_v2, %s4895_s9  ;;  %v2696_v26 = vmul.f32 %v4775_v51, %v5912_v60 }
 0x37b   :  { %1004 = vrot.lane.b32.xlu1 %v6186_v45, %s4891_s0 }
 0x37c   :  { %v6193_v39 = vpop.xlane.xlu1 %2516  ;;  %v4496_v32 = vpack.i.bf16 %v2696_v26, %v2692_v37 }
 0x37d   :  { %v4777_v54 = vpop.eup %4776 }
 0x37e   :  { %4497 = vrot.lane.b32.xlu0 %v4496_v32, %s4896_s10  ;;  %v4779_v48 = vpop.eup %4778  ;;  %v2705_v63 = vmul.f32 %v4777_v54, %v5921_v16 }
 0x37f   :  { %v2701_v4 = vmul.f32 %v4779_v48, %v5904_v59  ;;  %v4781_v51 = vpop.eup %4780 }
 0x380   :  { %v2526_v33 = vpop.xlane.xlu1 %2525  ;;  %v2702_v26 = vmul.f32 %v4781_v51, %v5924_v19 }
 0x381   :  { %v4501_v60 = vpack.i.bf16 %v2705_v63, %v2701_v4 }
 0x382   :  { %1002 = vrot.lane.b32.xlu0 %v6198_v47, %s4891_s0 }
 0x384   :  { %v2520_v7 = vpop.xlane.xlu1 %2519 }
 0x386   :  { %4502 = vrot.lane.b32.xlu0 %v4501_v60, %s4893_s8 }
 0x388   :  { %v2547_v42 = vpop.xlane.xlu1 %2546 }
 0x38c   :  { %v6207_v62 = vpop.xlane.xlu0 %2540 }
 0x390   :  { %v2550_v35 = vpop.xlane.xlu1 %2549  ;;  %v2514_v5 = vpop.xlane.xlu0 %2513 }
 0x391   :  { %4782 = vrcp.f32 %v2514_v5  ;;  %v6709_v5 = vld [vmem:[#allocation25_spill] sm:$0xff] }
 0x392   :  { %4784 = vrcp.f32 %v2496_v40 }
 0x394   :  { %v2544_v16 = vpop.xlane.xlu1 %2543  ;;  %v2508_v17 = vpop.xlane.xlu0 %2507 }
 0x395   :  { %4786 = vrcp.f32 %v2508_v17  ;;  %v6223_v17 = vpack.c.bf16 %v6709_v5, %v6709_v5 }
 0x398   :  { %v2535_v38 = vpop.xlane.xlu0 %2534  ;;  %v6209_v2 = vpop.xlane.xlu1 %2570 }
 0x399   :  { %4788 = vrcp.f32 %v2535_v38 }
 0x39a   :  { %4790 = vrcp.f32 %v2523_v34 }
 0x39b   :  { %4792 = vrcp.f32 %v2526_v33 }
 0x39c   :  { %v6211_v59 = vpop.xlane.xlu0 %2528  ;;  %v6213_v37 = vpop.xlane.xlu1 %2564 }
 0x39e   :  { %v4783_v52 = vpop.eup %4782 }
 0x39f   :  { %v2706_v40 = vmul.f32 %v4783_v52, %v5996_v31  ;;  %v4785_v32 = vpop.eup %4784 }
 0x3a0   :  { %v2538_v22 = vpop.xlane.xlu0 %2537  ;;  %v2700_v21 = vmul.f32 %v4785_v32, %v5935_v50  ;;  %v2574_v4 = vpop.xlane.xlu1 %2573 }
 0x3a1   :  { %4794 = vrcp.f32 %v2538_v22  ;;  %v4506_v54 = vpack.i.bf16 %v2706_v40, %v2702_v26 }
 0x3a2   :  { %v4787_v48 = vpop.eup %4786  ;;  %4796 = vrcp.f32 %v2520_v7 }
 0x3a3   :  { %4507 = vrot.lane.b32.xlu1 %v4506_v54, %s4895_s9  ;;  %v2704_v63 = vmul.f32 %v4787_v48, %v6009_v27 }
 0x3a4   :  { %v2532_v34 = vpop.xlane.xlu0 %2531  ;;  %v2568_v38 = vpop.xlane.xlu1 %2567 }
 0x3a5   :  { %4798 = vrcp.f32 %v2532_v34  ;;  %v4511_v33 = vpack.i.bf16 %v2704_v63, %v2700_v21 }
 0x3a6   :  { %v4789_v60 = vpop.eup %4788 }
 0x3a7   :  { %4512 = vrot.lane.b32.xlu1 %v4511_v33, %s4896_s10  ;;  %v4791_v31 = vpop.eup %4790  ;;  %v2713_v7 = vmul.f32 %v4789_v60, %v6018_v9  ;;  %v6710_v60 = vld [vmem:[#allocation27_spill] sm:$0xff] }
 0x3a8   :  { %v2559_v19 = vpop.xlane.xlu0 %2558  ;;  %v2709_v27 = vmul.f32 %v4791_v31, %v5944_v0  ;;  %v4793_v51 = vpop.eup %4792 }
 0x3a9   :  { %4800 = vrcp.f32 %v2559_v19  ;;  %v2710_v40 = vmul.f32 %v4793_v51, %v5962_v43  ;;  %v6242_v19 = vpack.c.bf16 %v6710_v60, %v6710_v60 }
 0x3aa   :  { %4802 = vrcp.f32 %v2547_v42  ;;  %v4516_v52 = vpack.i.bf16 %v2713_v7, %v2709_v27  ;;  %v2595_v42 = vpop.xlane.xlu1 %2594 }
 0x3ab   :  { %970 = vrot.lane.b32.xlu1 %v6223_v17, %s4891_s0  ;;  %4804 = vrcp.f32 %v2550_v35 }
 0x3ac   :  { %v6228_v50 = vpop.xlane.xlu0 %2588 }
 0x3ae   :  { %v4795_v22 = vpop.eup %4794  ;;  %v6237_v33 = vpop.xlane.xlu1 %2552 }
 0x3af   :  { %4517 = vrot.lane.b32.xlu1 %v4516_v52, %s4893_s8  ;;  %v2714_v9 = vmul.f32 %v4795_v22, %v6048_v8  ;;  %v4797_v32 = vpop.eup %4796 }
 0x3b0   :  { %v2562_v26 = vpop.xlane.xlu0 %2561  ;;  %v2708_v34 = vmul.f32 %v4797_v32, %v5970_v23 }
 0x3b1   :  { %4806 = vrcp.f32 %v2562_v26  ;;  %v4521_v54 = vpack.i.bf16 %v2714_v9, %v2710_v40 }
 0x3b2   :  { %v4799_v48 = vpop.eup %4798  ;;  %4808 = vrcp.f32 %v2544_v16  ;;  %v2598_v5 = vpop.xlane.xlu1 %2597 }
 0x3b3   :  { %4522 = vrot.lane.b32.xlu0 %v4521_v54, %s4895_s9  ;;  %v2712_v35 = vmul.f32 %v4799_v48, %v6055_v13 }
 0x3b4   :  { %v2556_v0 = vpop.xlane.xlu0 %2555 }
 0x3b5   :  { %4810 = vrcp.f32 %v2556_v0  ;;  %v4526_v21 = vpack.i.bf16 %v2712_v35, %v2708_v34 }
 0x3b6   :  { %v4801_v63 = vpop.eup %4800  ;;  %v2592_v26 = vpop.xlane.xlu1 %2591 }
 0x3b7   :  { %4527 = vrot.lane.b32.xlu0 %v4526_v21, %s4896_s10  ;;  %v4803_v8 = vpop.eup %4802  ;;  %v2721_v16 = vmul.f32 %v4801_v63, %v6067_v3 }
 0x3b8   :  { %v2583_v43 = vpop.xlane.xlu0 %2582  ;;  %v2717_v13 = vmul.f32 %v4803_v8, %v5979_v18  ;;  %v4805_v31 = vpop.eup %4804 }
 0x3b9   :  { %4812 = vrcp.f32 %v2583_v43  ;;  %v2718_v3 = vmul.f32 %v4805_v31, %v5999_v41 }
 0x3ba   :  { %4814 = vrcp.f32 %v6209_v2  ;;  %v4531_v7 = vpack.i.bf16 %v2721_v16, %v2717_v13  ;;  %v6260_v54 = vpop.xlane.xlu1 %2600  ;;  %v6712_v13 = vld [vmem:[#allocation31_spill] sm:$0xff] }
 0x3bb   :  { %972 = vrot.lane.b32.xlu0 %v6242_v19, %s4891_s0  ;;  %4816 = vrcp.f32 %v2574_v4 }
 0x3bc   :  { %v6248_v23 = vpop.xlane.xlu0 %2576  ;;  %4818 = vrcp.f32 %v6129_v57 }
 0x3be   :  { %v4807_v27 = vpop.eup %4806 }
 0x3bf   :  { %4532 = vrot.lane.b32.xlu0 %v4531_v7, %s4893_s8  ;;  %v2722_v2 = vmul.f32 %v4807_v27, %v6087_v6  ;;  %v4809_v52 = vpop.eup %4808 }
 0x3c0   :  { %v2586_v51 = vpop.xlane.xlu0 %2585  ;;  %v2716_v57 = vmul.f32 %v4809_v52, %v6012_v1 }
 0x3c1   :  { %4820 = vrcp.f32 %v2586_v51  ;;  %v4536_v22 = vpack.i.bf16 %v2722_v2, %v2718_v3 }
 0x3c2   :  { %4822 = vrcp.f32 %v6143_v44  ;;  %v4811_v18 = vpop.eup %4810  ;;  %v6711_v44 = vld [vmem:[#allocation30_spill] sm:$0xff] }
 0x3c3   :  { %4824 = vrcp.f32 %v2568_v38  ;;  %4537 = vrot.lane.b32.xlu1 %v4536_v22, %s4895_s9  ;;  %v2720_v40 = vmul.f32 %v4811_v18, %v6097_v36  ;;  %v6264_v48 = vpack.c.bf16 %v6711_v44, %v6711_v44  ;;  %v6714_v44 = vld [vmem:[#allocation5_spill] sm:$0xff] }
 0x3c4   :  { %v2580_v4 = vpop.xlane.xlu0 %2579  ;;  %v4458_v35 = vpop.permute.xlu1 %4457 }
 0x3c5   :  { %4826 = vrcp.f32 %v2580_v4  ;;  %v4541_v9 = vpack.i.bf16 %v2720_v40, %v2716_v57  ;;  %v4459_v2 = vunpack.i.l.bf16 %v4458_v35 }
 0x3c6   :  { %v4813_v41 = vpop.eup %4812  ;;  %4828 = vrcp.f32 %v2595_v42 }
 0x3c7   :  { %4542 = vrot.lane.b32.xlu1 %v4541_v9, %s4896_s10  ;;  %v4815_v32 = vpop.eup %4814  ;;  %v2729_v38 = vmul.f32 %v4813_v41, %v6107_v15 }
 0x3c8   :  { %v2607_v6 = vpop.xlane.xlu0 %2606  ;;  %v4817_v0 = vpop.eup %4816  ;;  %v2725_v36 = vmul.f32 %v4815_v32, %v6025_v12  ;;  %v6275_v12 = vpack.c.bf16 %v6712_v13, %v6712_v13  ;;  %v6713_v32 = vld [vmem:[#allocation33_spill] sm:$0xff] }
 0x3c9   :  { %v4819_v34 = vpop.eup %4818  ;;  %4830 = vrcp.f32 %v2607_v6  ;;  %v2726_v8 = vmul.f32 %v4817_v0, %v6051_v20  ;;  %v6715_v0 = vld [vmem:[#allocation34_spill] sm:$0xff] }
 0x3ca   :  { %v4546_v63 = vpack.i.bf16 %v2729_v38, %v2725_v36  ;;  %4832 = vrcp.f32 %v2592_v26  ;;  %v2675_v42 = vmul.f32 %v4819_v34, %v5794_v25  ;;  %v1084_v38 = vsel %vm769_vm1, %v6714_v44, %v6713_v32  ;;  %v6717_v36 = vld [vmem:[#allocation32_spill] sm:$0xff] }
 0x3cb   :  { %1006 = vrot.lane.b32.xlu1 %v6264_v48, %s4891_s0 }
 0x3cc   :  { %v2610_v1 = vpop.xlane.xlu0 %2609 }
 0x3cd   :  { %4834 = vrcp.f32 %v2610_v1  ;;  %v6716_v1 = vld [vmem:[#allocation6_spill] sm:$0xff] }
 0x3ce   :  { %v4821_v21 = vpop.eup %4820 }
 0x3cf   :  { %v4823_v43 = vpop.eup %4822  ;;  %v2730_v60 = vmul.f32 %v4821_v21, %v6123_v53  ;;  %4547 = vrot.lane.b32.xlu1 %v4546_v63, %s4893_s8  ;;  %v4460_v53 = vunpack.i.h.bf16 %v4458_v35 }
 0x3d0   :  { %v2604_v15 = vpop.xlane.xlu0 %2603  ;;  %v4825_v16 = vpop.eup %4824  ;;  %v2679_v51 = vmul.f32 %v4823_v43, %v5815_v61  ;;  %v6718_v43 = vld [vmem:[#allocation35_spill] sm:$0xff] }
 0x3d1   :  { %4836 = vrcp.f32 %v2604_v15  ;;  %v4468_v31 = vpop.permute.xlu1 %4467  ;;  %v4551_v7 = vpack.i.bf16 %v2730_v60, %v2726_v8  ;;  %v2724_v61 = vmul.f32 %v4825_v16, %v6063_v11  ;;  %v6719_v8 = vld [vmem:[#allocation7_spill] sm:$0xff]  ;;  %v6720_v15 = vld [vmem:[#allocation36_spill] sm:$0xff] }
 0x3d2   :  { %v4827_v27 = vpop.eup %4826  ;;  %v4470_v20 = vunpack.i.h.bf16 %v4468_v31  ;;  %v4469_v3 = vunpack.i.l.bf16 %v4468_v31  ;;  %4838 = vrcp.f32 %v2598_v5  ;;  %v1020_v60 = vsel %vm769_vm1, %v6719_v8, %v6718_v43  ;;  %v6721_v16 = vld [vmem:[#allocation8_spill] sm:$0xff]  ;;  %v6728_v43 = vld [vmem:[#allocation38_spill] sm:$0xff]  ;;  %v6729_v8 = vld [vmem:[#allocation9_spill] sm:$0xff] }
 0x3d3   :  { %4552 = vrot.lane.b32.xlu0 %v4551_v7, %s4895_s9  ;;  %v2728_v52 = vmul.f32 %v4827_v27, %v6127_v56  ;;  %976 = vrot.lane.b32.xlu1 %v6275_v12, %s4891_s0  ;;  %4840 = vrcp.f32 %v6149_v10  ;;  %v4829_v11 = vpop.eup %4828  ;;  %v1088_v10 = vsel %vm769_vm1, %v6716_v1, %v6715_v0  ;;  %v1024_v13 = vsel %vm769_vm1, %v6721_v16, %v6720_v15  ;;  %v6730_v15 = vld [vmem:[#allocation39_spill] sm:$0xff]  ;;  %v6731_v16 = vld [vmem:[#allocation10_spill] sm:$0xff] }
 0x3d4   :  { %v2932_v22 = vsel %vm2034_vm2, %v2679_v51, %v4470_v20  ;;  %v2931_v18 = vsel %vm2034_vm2, %v2675_v42, %v4469_v3  ;;  %v4463_v25 = vpop.permute.xlu0 %4462  ;;  %4842 = vrcp.f32 %v6152_v14  ;;  %v6301_v14 = vpack.c.bf16 %v6717_v36, %v6717_v36  ;;  %v6722_v42 = vld [vmem:[#allocation29_spill] sm:$0xff] }
 0x3d5   :  { %v2948_v26 = vsel %vm2947_vm4, %v2931_v18, %v4459_v2  ;;  %v2949_v5 = vsel %vm2947_vm4, %v2932_v22, %v4460_v53  ;;  %v4465_v4 = vunpack.i.h.bf16 %v4463_v25  ;;  %v4464_v57 = vunpack.i.l.bf16 %v4463_v25  ;;  %v6723_v53 = vld [vmem:[#allocation44_spill] sm:$0xff]  ;;  %v6724_v2 = vld [vmem:[#allocation58_spill] sm:$0xff]  ;;  %v6725_v18 = vld [vmem:[#allocation55_spill] sm:$0xff] }
 0x3d6   :  { %v4556_v56 = vpack.i.bf16 %v2728_v52, %v2724_v61  ;;  %v4831_v34 = vpop.eup %4830  ;;  %v6319_v31 = vpack.c.bf16 %v6722_v42, %v6722_v42  ;;  %v2733_v3 = vmul.f32 %v4829_v11, %v6073_v58  ;;  %4844 = vrcp.f32 %v6723_v53  ;;  %v6735_v53 = vld [vmem:[#allocation12_spill] sm:$0xff] }
 0x3d7   :  { %v2966_v40 = vsel %vm2964_vm5, %v2949_v5, %v4465_v4  ;;  %v2965_v9 = vsel %vm2964_vm5, %v2948_v26, %v4464_v57  ;;  %v4833_v35 = vpop.eup %4832  ;;  %v2737_v7 = vmul.f32 %v4831_v34, %v6133_v49  ;;  %4846 = vrcp.f32 %v6169_v28  ;;  %v6726_v4 = vld [vmem:[#allocation67_spill] sm:$0xff] }
 0x3d8   :  { %v2982_v41 = vpack.c.bf16 %v2966_v40, %v2966_v40  ;;  %v2981_v6 = vpack.c.bf16 %v2965_v9, %v2965_v9  ;;  %4557 = vrot.lane.b32.xlu0 %v4556_v56, %s4896_s10  ;;  %v2732_v27 = vmul.f32 %v4833_v35, %v6103_v46  ;;  %v4473_v58 = vpop.permute.xlu0 %4472  ;;  %v6727_v56 = vld [vmem:[#allocation68_spill] sm:$0xff]  ;;  %4848 = vrcp.f32 %v6174_v24 }
 0x3d9   :  { %v4566_v22 = vpack.i.bf16 %v2737_v7, %v2733_v3  ;;  %v4475_v28 = vunpack.i.h.bf16 %v4473_v58  ;;  %v6734_v3 = vld [vmem:[#allocation43_spill] sm:$0xff]  ;;  %4850 = vrcp.f32 %v6205_v55 }
 0x3da   :  { %4308 = vmatmul.mubr.msk.bf16.vlgmr.msra.gmra.mxu0 %vm2997_vm6, %v2981_v6  ;;  %4316 = vmatmul.mubr.msk.bf16.vlgmr.msra.gmra.mxu1 %vm2997_vm6, %v2982_v41  ;;  %v4835_v21 = vpop.eup %4834  ;;  %v4474_v6 = vunpack.i.l.bf16 %v4473_v58  ;;  %4852 = vrcp.f32 %v6193_v39 }
 0x3db   :  { %4320 = vmatpush3.bf16.msra.mxu0 %v1084_v38  ;;  %4328 = vmatpush3.bf16.msra.mxu1 %v1088_v10  ;;  %v2738_v52 = vmul.f32 %v4835_v21, %v6724_v2  ;;  %4854 = vrcp.f32 %v6211_v59 }
 0x3dc   :  { %1008 = vrot.lane.b32.xlu0 %v6301_v14, %s4891_s0  ;;  %4321 = vmatprep.subr.bf16.mxu0 %v6706_v30  ;;  %4856 = vrcp.f32 %v6207_v62 }
 0x3dd   :  { %4329 = vmatprep.subr.bf16.mxu1 %v6706_v30  ;;  %4323 = vmatprep.mubr.msk.bf16.mxu0 %vm4894_vm3, %v6706_v30  ;;  %v4478_v46 = vpop.permute.xlu1 %4477  ;;  %4858 = vrcp.f32 %v6237_v33 }
 0x3de   :  { %v4837_v63 = vpop.eup %4836  ;;  %4331 = vmatprep.mubr.msk.bf16.mxu1 %vm4894_vm3, %v6706_v30  ;;  %v4480_v11 = vunpack.i.h.bf16 %v4478_v46  ;;  %v4479_v32 = vunpack.i.l.bf16 %v4478_v46  ;;  %4860 = vrcp.f32 %v6213_v37 }
 0x3df   :  { %4322 = vmatpush3.bf16.msra.mxu0 %v1020_v60  ;;  %4330 = vmatpush3.bf16.msra.mxu1 %v1024_v13  ;;  %v2736_v51 = vmul.f32 %v4837_v63, %v6141_v29  ;;  %v4839_v20 = vpop.eup %4838  ;;  %v1092_v60 = vsel %vm769_vm1, %v6729_v8, %v6728_v43  ;;  %v1096_v13 = vsel %vm769_vm1, %v6731_v16, %v6730_v15  ;;  %4862 = vrcp.f32 %v6248_v23 }
 0x3e0   :  { %974 = vrot.lane.b32.xlu0 %v6319_v31, %s4891_s0  ;;  %4335 = vmatprep.subr.bf16.mxu0 %v6706_v30  ;;  %v4841_v29 = vpop.eup %4840  ;;  %v2734_v25 = vmul.f32 %v4839_v20, %v6725_v18  ;;  %4864 = vrcp.f32 %v6228_v50 }
 0x3e1   :  { %v4561_v49 = vpack.i.bf16 %v2736_v51, %v2732_v27  ;;  %4343 = vmatprep.subr.bf16.mxu1 %v6706_v30  ;;  %v4843_v61 = vpop.eup %4842  ;;  %v2683_v57 = vmul.f32 %v4841_v29, %v6726_v4  ;;  %v6732_v27 = vld [vmem:[#allocation41_spill] sm:$0xff]  ;;  %v6733_v51 = vld [vmem:[#allocation11_spill] sm:$0xff]  ;;  %4866 = vrcp.f32 %v6260_v54 }
 0x3e2   :  { %v4571_v26 = vpack.i.bf16 %v2738_v52, %v2734_v25  ;;  %v2687_v40 = vmul.f32 %v4843_v61, %v6727_v56  ;;  %v1032_v20 = vsel %vm769_vm1, %v6733_v51, %v6732_v27  ;;  %v6736_v52 = vld [vmem:[#allocation69_spill] sm:$0xff]  ;;  %v6747_v51 = vld [vmem:[#allocation72_spill] sm:$0xff] }
 0x3e3   :  { %4562 = vrot.lane.b32.xlu1 %v4561_v49, %s4896_s10  ;;  %v4845_v63 = vpop.eup %4844  ;;  %v1028_v49 = vsel %vm769_vm1, %v6735_v53, %v6734_v3 }
 0x3e4   :  { %4567 = vrot.lane.b32.xlu0 %v4566_v22, %s4893_s8  ;;  %v4847_v42 = vpop.eup %4846  ;;  %v2691_v46 = vmul.f32 %v4845_v63, %v6736_v52  ;;  %v6737_v22 = vld [vmem:[#allocation70_spill] sm:$0xff] }
 0x3e5   :  { %v4483_v5 = vpop.permute.xlu1 %4482  ;;  %v2695_v29 = vmul.f32 %v4847_v42, %v6737_v22  ;;  %v4849_v15 = vpop.eup %4848  ;;  %v6746_v42 = vld [vmem:[#allocation71_spill] sm:$0xff] }
 0x3e6   :  { %v4485_v9 = vunpack.i.h.bf16 %v4483_v5  ;;  %v4484_v41 = vunpack.i.l.bf16 %v4483_v5  ;;  %v4851_v16 = vpop.eup %4850 }
 0x3e7   :  { %4572 = vrot.lane.b32.xlu1 %v4571_v26, %s4895_s9 }
 0x3e8   :  { %v2934_v44 = vsel %vm2034_vm2, %v2687_v40, %v4485_v9  ;;  %v2933_v38 = vsel %vm2034_vm2, %v2683_v57, %v4484_v41 }
 0x3e9   :  { %v2950_v0 = vsel %vm2947_vm4, %v2933_v38, %v4474_v6  ;;  %v2951_v1 = vsel %vm2947_vm4, %v2934_v44, %v4475_v28  ;;  %v4488_v7 = vpop.permute.xlu1 %4487  ;;  %v6740_v38 = vld [vmem:[#allocation46_spill] sm:$0xff] }
 0x3ea   :  { %v2967_v10 = vsel %vm2964_vm5, %v2950_v0, %v4479_v32  ;;  %v2968_v36 = vsel %vm2964_vm5, %v2951_v1, %v4480_v11  ;;  %v4490_v61 = vunpack.i.h.bf16 %v4488_v7  ;;  %v4489_v58 = vunpack.i.l.bf16 %v4488_v7  ;;  %v6738_v11 = vld [vmem:[#allocation45_spill] sm:$0xff]  ;;  %v6741_v0 = vld [vmem:[#allocation14_spill] sm:$0xff] }
 0x3eb   :  { %v2983_v34 = vpack.c.bf16 %v2967_v10, %v2967_v10  ;;  %v2984_v35 = vpack.c.bf16 %v2968_v36, %v2968_v36  ;;  %v6739_v32 = vld [vmem:[#allocation13_spill] sm:$0xff]  ;;  %v1104_v1 = vsel %vm769_vm1, %v6741_v0, %v6740_v38  ;;  %v6743_v36 = vld [vmem:[#allocation15_spill] sm:$0xff]  ;;  %v2699_v7 = vmul.f32 %v4849_v15, %v6746_v42 }
 0x3ec   :  { %v4493_v21 = vpop.permute.xlu0 %4492  ;;  %v1100_v44 = vsel %vm769_vm1, %v6739_v32, %v6738_v11  ;;  %v6742_v10 = vld [vmem:[#allocation49_spill] sm:$0xff] }
 0x3ed   :  { %4324 = vmatmul.mubr.msk.bf16.vlgmr.msra.gmra.mxu0 %vm2997_vm6, %v2983_v34  ;;  %4332 = vmatmul.mubr.msk.bf16.vlgmr.msra.gmra.mxu1 %vm2997_vm6, %v2984_v35  ;;  %v4495_v26 = vunpack.i.h.bf16 %v4493_v21  ;;  %v4494_v5 = vunpack.i.l.bf16 %v4493_v21  ;;  %v1036_v34 = vsel %vm769_vm1, %v6743_v36, %v6742_v10  ;;  %v6744_v35 = vld [vmem:[#allocation51_spill] sm:$0xff]  ;;  %v6745_v21 = vld [vmem:[#allocation16_spill] sm:$0xff]  ;;  %v6400_v43 = vpop.permute.xlu1 %1004 }
 0x3ee   :  { %4336 = vmatpush3.bf16.msra.mxu0 %v1092_v60  ;;  %4344 = vmatpush3.bf16.msra.mxu1 %v1096_v13  ;;  %v1040_v63 = vsel %vm769_vm1, %v6745_v21, %v6744_v35 }
 0x3ef   :  { %4337 = vmatprep.subr.bf16.mxu0 %v6706_v30  ;;  %4345 = vmatprep.subr.bf16.mxu1 %v6706_v30 }
 0x3f0   :  { %v4498_v2 = vpop.permute.xlu0 %4497  ;;  %4339 = vmatprep.mubr.msk.bf16.mxu0 %vm4894_vm3, %v6706_v30  ;;  %4347 = vmatprep.mubr.msk.bf16.mxu1 %vm4894_vm3, %v6706_v30 }
 0x3f1   :  { %v4500_v18 = vunpack.i.h.bf16 %v4498_v2  ;;  %v4499_v25 = vunpack.i.l.bf16 %v4498_v2 }
 0x3f2   :  { %4338 = vmatpush3.bf16.msra.mxu0 %v1028_v49  ;;  %4346 = vmatpush3.bf16.msra.mxu1 %v1032_v20  ;;  %v2703_v20 = vmul.f32 %v4851_v16, %v6747_v51 }
 0x3f3   :  { %v2936_v4 = vsel %vm2034_vm2, %v2695_v29, %v4500_v18  ;;  %v2935_v57 = vsel %vm2034_vm2, %v2691_v46, %v4499_v25  ;;  %4351 = vmatprep.subr.bf16.mxu0 %v6706_v30  ;;  %4359 = vmatprep.subr.bf16.mxu1 %v6706_v30 }
 0x3f4   :  { %v2953_v56 = vsel %vm2947_vm4, %v2936_v4, %v4490_v61  ;;  %v2952_v40 = vsel %vm2947_vm4, %v2935_v57, %v4489_v58  ;;  %v6402_v8 = vpop.permute.xlu0 %1002  ;;  %v6748_v61 = vld [vmem:[#allocation54_spill] sm:$0xff]  ;;  %v6749_v58 = vld [vmem:[#allocation17_spill] sm:$0xff] }
 0x3f5   :  { %v2969_v9 = vsel %vm2964_vm5, %v2952_v40, %v4494_v5  ;;  %v2970_v41 = vsel %vm2964_vm5, %v2953_v56, %v4495_v26  ;;  %v1108_v26 = vsel %vm769_vm1, %v6749_v58, %v6748_v61  ;;  %v6750_v5 = vld [vmem:[#allocation56_spill] sm:$0xff]  ;;  %v6751_v4 = vld [vmem:[#allocation18_spill] sm:$0xff]  ;;  %v6752_v40 = vld [vmem:[#allocation59_spill] sm:$0xff] }
 0x3f6   :  { %v2985_v28 = vpack.c.bf16 %v2969_v9, %v2969_v9  ;;  %v2986_v6 = vpack.c.bf16 %v2970_v41, %v2970_v41  ;;  %v1112_v57 = vsel %vm769_vm1, %v6751_v4, %v6750_v5  ;;  %v6753_v9 = vld [vmem:[#allocation19_spill] sm:$0xff]  ;;  %v6766_v4 = vld [vmem:[#allocation74_spill] sm:$0xff] }
 0x3f7   :  { %v1048_v41 = vsel %vm769_vm1, %v6753_v9, %v6752_v40  ;;  %v6767_v9 = vld [vmem:[#allocation52_spill] sm:$0xff] }
 0x3f8   :  { %4340 = vmatmul.mubr.msk.bf16.vlgmr.msra.gmra.mxu0 %vm2997_vm6, %v2985_v28  ;;  %4348 = vmatmul.mubr.msk.bf16.vlgmr.msra.gmra.mxu1 %vm2997_vm6, %v2986_v6  ;;  %v4503_v13 = vpop.permute.xlu0 %4502  ;;  %v6754_v28 = vld [vmem:[#allocation61_spill] sm:$0xff]  ;;  %v6755_v6 = vld [vmem:[#allocation20_spill] sm:$0xff] }
 0x3f9   :  { %4352 = vmatpush3.bf16.msra.mxu0 %v1100_v44  ;;  %4360 = vmatpush3.bf16.msra.mxu1 %v1104_v1  ;;  %v4505_v55 = vunpack.i.h.bf16 %v4503_v13  ;;  %v4504_v53 = vunpack.i.l.bf16 %v4503_v13  ;;  %v1044_v11 = vsel %vm769_vm1, %v6755_v6, %v6754_v28  ;;  %v4853_v44 = vpop.eup %4852  ;;  %v6756_v1 = vld [vmem:[#allocation73_spill] sm:$0xff] }
 0x3fa   :  { %4353 = vmatprep.subr.bf16.mxu0 %v6706_v30  ;;  %4361 = vmatprep.subr.bf16.mxu1 %v6706_v30  ;;  %v4855_v38 = vpop.eup %4854  ;;  %v2707_v10 = vmul.f32 %v4853_v44, %v6756_v1 }
 0x3fb   :  { %4355 = vmatprep.mubr.msk.bf16.mxu0 %vm4894_vm3, %v6706_v30  ;;  %4363 = vmatprep.mubr.msk.bf16.mxu1 %vm4894_vm3, %v6706_v30  ;;  %v4857_v58 = vpop.eup %4856 }
 0x3fd   :  { %4354 = vmatpush3.bf16.msra.mxu0 %v1036_v34  ;;  %4362 = vmatpush3.bf16.msra.mxu1 %v1040_v63  ;;  %v6757_v34 = vld [vmem:[#allocation48_spill] sm:$0xff] }
 0x3fe   :  { %4367 = vmatprep.subr.bf16.mxu0 %v6706_v30  ;;  %4375 = vmatprep.subr.bf16.mxu1 %v6706_v30  ;;  %v2711_v35 = vmul.f32 %v4855_v38, %v6757_v34 }
 0x415   :  { %v4508_v60 = vpop.permute.xlu1 %4507 }
 0x416   :  { %v4510_v49 = vunpack.i.h.bf16 %v4508_v60  ;;  %v4509_v2 = vunpack.i.l.bf16 %v4508_v60 }
 0x419   :  { %v4513_v27 = vpop.permute.xlu1 %4512 }
 0x41a   :  { %v4515_v24 = vunpack.i.h.bf16 %v4513_v27  ;;  %v4514_v3 = vunpack.i.l.bf16 %v4513_v27 }
 0x41c   :  { %v2938_v52 = vsel %vm2034_vm2, %v2703_v20, %v4515_v24  ;;  %v2937_v46 = vsel %vm2034_vm2, %v2699_v7, %v4514_v3  ;;  %v6758_v3 = vld [vmem:[#allocation62_spill] sm:$0xff] }
 0x41d   :  { %v2954_v22 = vsel %vm2947_vm4, %v2937_v46, %v4504_v53  ;;  %v2955_v39 = vsel %vm2947_vm4, %v2938_v52, %v4505_v55  ;;  %v6422_v56 = vpop.permute.xlu1 %970  ;;  %v6759_v55 = vld [vmem:[#allocation21_spill] sm:$0xff] }
 0x41e   :  { %v2971_v29 = vsel %vm2964_vm5, %v2954_v22, %v4509_v2  ;;  %v2972_v59 = vsel %vm2964_vm5, %v2955_v39, %v4510_v49  ;;  %v1120_v53 = vsel %vm769_vm1, %v6759_v55, %v6758_v3  ;;  %v6760_v49 = vld [vmem:[#allocation64_spill] sm:$0xff]  ;;  %v6761_v2 = vld [vmem:[#allocation22_spill] sm:$0xff]  ;;  %v6762_v22 = vld [vmem:[#allocation65_spill] sm:$0xff] }
 0x41f   :  { %v2987_v18 = vpack.c.bf16 %v2971_v29, %v2971_v29  ;;  %v2988_v25 = vpack.c.bf16 %v2972_v59, %v2972_v59  ;;  %v1116_v52 = vsel %vm769_vm1, %v6761_v2, %v6760_v49  ;;  %v6763_v39 = vld [vmem:[#allocation23_spill] sm:$0xff]  ;;  %v6764_v59 = vld [vmem:[#allocation66_spill] sm:$0xff] }
 0x420   :  { %v1052_v29 = vsel %vm769_vm1, %v6763_v39, %v6762_v22 }
 0x421   :  { %4356 = vmatmul.mubr.msk.bf16.vlgmr.msra.gmra.mxu0 %vm2997_vm6, %v2987_v18  ;;  %4364 = vmatmul.mubr.msk.bf16.vlgmr.msra.gmra.mxu1 %vm2997_vm6, %v2988_v25  ;;  %v4518_v0 = vpop.permute.xlu1 %4517  ;;  %v6765_v18 = vld [vmem:[#allocation24_spill] sm:$0xff] }
 0x422   :  { %4368 = vmatpush3.bf16.msra.mxu0 %v1108_v26  ;;  %4376 = vmatpush3.bf16.msra.mxu1 %v1112_v57  ;;  %v4520_v60 = vunpack.i.h.bf16 %v4518_v0  ;;  %v4519_v15 = vunpack.i.l.bf16 %v4518_v0  ;;  %v1056_v25 = vsel %vm769_vm1, %v6765_v18, %v6764_v59  ;;  %v4859_v26 = vpop.eup %4858  ;;  %v2715_v57 = vmul.f32 %v4857_v58, %v6766_v4  ;;  %v6771_v58 = vld [vmem:[#allocation42_spill] sm:$0xff] }
 0x423   :  { %4369 = vmatprep.subr.bf16.mxu0 %v6706_v30  ;;  %4377 = vmatprep.subr.bf16.mxu1 %v6706_v30 }
 0x424   :  { %4371 = vmatprep.mubr.msk.bf16.mxu0 %vm4894_vm3, %v6706_v30  ;;  %4379 = vmatprep.mubr.msk.bf16.mxu1 %vm4894_vm3, %v6706_v30 }
 0x425   :  { %v4523_v32 = vpop.permute.xlu0 %4522 }
 0x426   :  { %4370 = vmatpush3.bf16.msra.mxu0 %v1044_v11  ;;  %4378 = vmatpush3.bf16.msra.mxu1 %v1048_v41  ;;  %v4525_v16 = vunpack.i.h.bf16 %v4523_v32  ;;  %v4524_v13 = vunpack.i.l.bf16 %v4523_v32  ;;  %v2719_v41 = vmul.f32 %v4859_v26, %v6767_v9 }
 0x427   :  { %4383 = vmatprep.subr.bf16.mxu0 %v6706_v30  ;;  %4391 = vmatprep.subr.bf16.mxu1 %v6706_v30 }
 0x429   :  { %v4528_v36 = vpop.permute.xlu0 %4527 }
 0x42a   :  { %v4530_v21 = vunpack.i.h.bf16 %v4528_v36  ;;  %v4529_v63 = vunpack.i.l.bf16 %v4528_v36 }
 0x42c   :  { %v2940_v42 = vsel %vm2034_vm2, %v2711_v35, %v4530_v21  ;;  %v2939_v7 = vsel %vm2034_vm2, %v2707_v10, %v4529_v63  ;;  %v1128_v21 = vsel %vm769_vm1, %v6186_v45, %v6400_v43  ;;  %v1124_v63 = vsel %vm769_vm1, %v6198_v47, %v6402_v8  ;;  %v4861_v43 = vpop.eup %4860 }
 0x42d   :  { %v2957_v27 = vsel %vm2947_vm4, %v2940_v42, %v4520_v60  ;;  %v2956_v62 = vsel %vm2947_vm4, %v2939_v7, %v4519_v15  ;;  %v973_v46 = vpop.permute.xlu0 %972  ;;  %v1060_v47 = vsel %vm769_vm1, %v6223_v17, %v6422_v56  ;;  %v4863_v8 = vpop.eup %4862  ;;  %v6769_v42 = vld [vmem:[#allocation57_spill] sm:$0xff] }
 0x42e   :  { %v2973_v51 = vsel %vm2964_vm5, %v2956_v62, %v4524_v13  ;;  %v2974_v33 = vsel %vm2964_vm5, %v2957_v27, %v4525_v16  ;;  %v1064_v50 = vsel %vm769_vm1, %v6242_v19, %v973_v46  ;;  %v6768_v16 = vld [vmem:[#allocation37_spill] sm:$0xff]  ;;  %v2727_v7 = vmul.f32 %v4863_v8, %v6769_v42  ;;  %v4865_v46 = vpop.eup %4864 }
 0x42f   :  { %v2989_v20 = vpack.c.bf16 %v2973_v51, %v2973_v51  ;;  %v2990_v24 = vpack.c.bf16 %v2974_v33, %v2974_v33  ;;  %v2723_v13 = vmul.f32 %v4861_v43, %v6768_v16  ;;  %v4867_v39 = vpop.eup %4866 }
 0x430   :  { %v2735_v26 = vmul.f32 %v4867_v39, %v6771_v58 }
 0x431   :  { %4372 = vmatmul.mubr.msk.bf16.vlgmr.msra.gmra.mxu0 %vm2997_vm6, %v2989_v20  ;;  %4380 = vmatmul.mubr.msk.bf16.vlgmr.msra.gmra.mxu1 %vm2997_vm6, %v2990_v24  ;;  %v4533_v5 = vpop.permute.xlu0 %4532 }
 0x432   :  { %4384 = vmatpush3.bf16.msra.mxu0 %v1116_v52  ;;  %4392 = vmatpush3.bf16.msra.mxu1 %v1120_v53  ;;  %v4535_v11 = vunpack.i.h.bf16 %v4533_v5  ;;  %v4534_v32 = vunpack.i.l.bf16 %v4533_v5 }
 0x433   :  { %4385 = vmatprep.subr.bf16.mxu0 %v6706_v30  ;;  %4393 = vmatprep.subr.bf16.mxu1 %v6706_v30 }
 0x434   :  { %4387 = vmatprep.mubr.msk.bf16.mxu0 %vm4894_vm3, %v6706_v30  ;;  %4395 = vmatprep.mubr.msk.bf16.mxu1 %vm4894_vm3, %v6706_v30 }
 0x435   :  { %v4538_v61 = vpop.permute.xlu1 %4537 }
 0x436   :  { %4386 = vmatpush3.bf16.msra.mxu0 %v1052_v29  ;;  %4394 = vmatpush3.bf16.msra.mxu1 %v1056_v25  ;;  %v4540_v44 = vunpack.i.h.bf16 %v4538_v61  ;;  %v4539_v38 = vunpack.i.l.bf16 %v4538_v61  ;;  %v6770_v25 = vld [vmem:[#allocation40_spill] sm:$0xff] }
 0x437   :  { %4399 = vmatprep.subr.bf16.mxu0 %v6706_v30  ;;  %4407 = vmatprep.subr.bf16.mxu1 %v6706_v30  ;;  %v2731_v61 = vmul.f32 %v4865_v46, %v6770_v25 }
 0x439   :  { %v4543_v40 = vpop.permute.xlu1 %4542 }
 0x43a   :  { %v4545_v28 = vunpack.i.h.bf16 %v4543_v40  ;;  %v4544_v6 = vunpack.i.l.bf16 %v4543_v40 }
 0x43c   :  { %v2942_v0 = vsel %vm2034_vm2, %v2719_v41, %v4545_v28  ;;  %v2941_v1 = vsel %vm2034_vm2, %v2715_v57, %v4544_v6 }
 0x43d   :  { %v2958_v10 = vsel %vm2947_vm4, %v2941_v1, %v4534_v32  ;;  %v2959_v37 = vsel %vm2947_vm4, %v2942_v0, %v4535_v11  ;;  %v1007_v60 = vpop.permute.xlu1 %1006 }
 0x43e   :  { %v2975_v36 = vsel %vm2964_vm5, %v2958_v10, %v4539_v38  ;;  %v2976_v23 = vsel %vm2964_vm5, %v2959_v37, %v4540_v44  ;;  %v1132_v29 = vsel %vm769_vm1, %v6264_v48, %v1007_v60 }
 0x43f   :  { %v2991_v34 = vpack.c.bf16 %v2975_v36, %v2975_v36  ;;  %v2992_v35 = vpack.c.bf16 %v2976_v23, %v2976_v23 }
 0x441   :  { %4388 = vmatmul.mubr.msk.bf16.vlgmr.msra.gmra.mxu0 %vm2997_vm6, %v2991_v34  ;;  %4396 = vmatmul.mubr.msk.bf16.vlgmr.msra.gmra.mxu1 %vm2997_vm6, %v2992_v35  ;;  %v4548_v54 = vpop.permute.xlu1 %4547 }
 0x442   :  { %4400 = vmatpush3.bf16.msra.mxu0 %v1124_v63  ;;  %4408 = vmatpush3.bf16.msra.mxu1 %v1128_v21  ;;  %v4550_v17 = vunpack.i.h.bf16 %v4548_v54  ;;  %v4549_v56 = vunpack.i.l.bf16 %v4548_v54 }
 0x443   :  { %4401 = vmatprep.subr.bf16.mxu0 %v6706_v30  ;;  %4409 = vmatprep.subr.bf16.mxu1 %v6706_v30 }
 0x444   :  { %4403 = vmatprep.mubr.msk.bf16.mxu0 %vm4894_vm3, %v6706_v30  ;;  %4411 = vmatprep.mubr.msk.bf16.mxu1 %vm4894_vm3, %v6706_v30 }
 0x445   :  { %v4553_v45 = vpop.permute.xlu0 %4552  ;;  %v977_v22 = vpop.permute.xlu1 %976 }
 0x446   :  { %4402 = vmatpush3.bf16.msra.mxu0 %v1060_v47  ;;  %4410 = vmatpush3.bf16.msra.mxu1 %v1064_v50  ;;  %v4555_v51 = vunpack.i.h.bf16 %v4553_v45  ;;  %v4554_v19 = vunpack.i.l.bf16 %v4553_v45  ;;  %v1072_v48 = vsel %vm769_vm1, %v6275_v12, %v977_v22 }
 0x447   :  { %4415 = vmatprep.subr.bf16.mxu0 %v6706_v30  ;;  %4423 = vmatprep.subr.bf16.mxu1 %v6706_v30 }
 0x44a   :  { %v4558_v15 = vpop.permute.xlu0 %4557 }
 0x44b   :  { %v4560_v27 = vunpack.i.h.bf16 %v4558_v15  ;;  %v4559_v62 = vunpack.i.l.bf16 %v4558_v15 }
 0x44d   :  { %v2944_v33 = vsel %vm2034_vm2, %v2727_v7, %v4560_v27  ;;  %v2943_v20 = vsel %vm2034_vm2, %v2723_v13, %v4559_v62 }
 0x44e   :  { %v2961_v24 = vsel %vm2947_vm4, %v2944_v33, %v4550_v17  ;;  %v2960_v3 = vsel %vm2947_vm4, %v2943_v20, %v4549_v56  ;;  %v1009_v55 = vpop.permute.xlu0 %1008 }
 0x44f   :  { %v2977_v53 = vsel %vm2964_vm5, %v2960_v3, %v4554_v19  ;;  %v2978_v49 = vsel %vm2964_vm5, %v2961_v24, %v4555_v51  ;;  %v1136_v59 = vsel %vm769_vm1, %v6301_v14, %v1009_v55 }
 0x450   :  { %v2993_v2 = vpack.c.bf16 %v2977_v53, %v2977_v53  ;;  %v2994_v52 = vpack.c.bf16 %v2978_v49, %v2978_v49 }
 0x452   :  { %v975_v18 = vpop.permute.xlu0 %974  ;;  %4404 = vmatmul.mubr.msk.bf16.vlgmr.msra.gmra.mxu0 %vm2997_vm6, %v2993_v2  ;;  %4412 = vmatmul.mubr.msk.bf16.vlgmr.msra.gmra.mxu1 %vm2997_vm6, %v2994_v52 }
 0x453   :  { %4416 = vmatpush3.bf16.msra.mxu0 %v1132_v29  ;;  %4424 = vmatpush3.bf16.msra.mxu1 %v1136_v59  ;;  %v1068_v14 = vsel %vm769_vm1, %v6319_v31, %v975_v18 }
 0x454   :  { %4417 = vmatprep.subr.bf16.mxu0 %v6706_v30  ;;  %4425 = vmatprep.subr.bf16.mxu1 %v6706_v30 }
 0x455   :  { %v4563_v5 = vpop.permute.xlu1 %4562  ;;  %4419 = vmatprep.mubr.msk.bf16.mxu0 %vm4894_vm3, %v6706_v30  ;;  %4427 = vmatprep.mubr.msk.bf16.mxu1 %vm4894_vm3, %v6706_v30 }
 0x456   :  { %v4565_v4 = vunpack.i.h.bf16 %v4563_v5  ;;  %v4564_v57 = vunpack.i.l.bf16 %v4563_v5  ;;  %v4568_v40 = vpop.permute.xlu0 %4567 }
 0x457   :  { %v4570_v9 = vunpack.i.h.bf16 %v4568_v40  ;;  %v4569_v41 = vunpack.i.l.bf16 %v4568_v40  ;;  %4418 = vmatpush3.bf16.msra.mxu0 %v1068_v14  ;;  %4426 = vmatpush3.bf16.msra.mxu1 %v1072_v48 }
 0x458   :  { %v2946_v28 = vsel %vm2034_vm2, %v2735_v26, %v4565_v4  ;;  %v2945_v6 = vsel %vm2034_vm2, %v2731_v61, %v4564_v57 }
 0x459   :  { %v4573_v11 = vpop.permute.xlu1 %4572  ;;  %v2963_v44 = vsel %vm2947_vm4, %v2946_v28, %v4570_v9  ;;  %v2962_v12 = vsel %vm2947_vm4, %v2945_v6, %v4569_v41 }
 0x45a   :  { %v4575_v32 = vunpack.i.h.bf16 %v4573_v11  ;;  %v4574_v30 = vunpack.i.l.bf16 %v4573_v11 }
 0x45c   :  { %v2979_v31 = vsel %vm2964_vm5, %v2962_v12, %v4574_v30  ;;  %v2980_v38 = vsel %vm2964_vm5, %v2963_v44, %v4575_v32 }
 0x45d   :  { %v2995_v0 = vpack.c.bf16 %v2979_v31, %v2979_v31  ;;  %v2996_v1 = vpack.c.bf16 %v2980_v38, %v2980_v38 }
 0x45f   :  { %4420 = vmatmul.mubr.msk.bf16.vlgmr.msra.gmra.mxu0 %vm2997_vm6, %v2995_v0  ;;  %4428 = vmatmul.mubr.msk.bf16.vlgmr.msra.gmra.mxu1 %vm2997_vm6, %v2996_v1 }
 0x49a   :  { %v3035_v10 = vpop.f32.mrf.mxu0  ;;  %v3078_v37 = vpop.f32.mrf.mxu1 }
 0x49b   :  { %v4059_v36 = vpack.c.bf16 %v3035_v10, %v3035_v10  ;;  %v4060_v23 = vpack.c.bf16 %v3078_v37, %v3078_v37 }
 0x49c   :  { %v4309_v34 = vpop.f32.mrf.mxu0  ;;  %v4317_v35 = vpop.f32.mrf.mxu1 }
 0x49d   :  { %3751 = vst.msk [vmem:[#allocation2] sm:$0xf] %vm3750_vm7, %v4059_v36  ;;  %3752 = vst.msk [vmem:[#allocation2 + $0x4] sm:$0xf] %vm3750_vm7, %v4060_v23 }
 0x49e   :  { %v3038_v21 = vpop.f32.mrf.mxu0  ;;  %v3081_v63 = vpop.f32.mrf.mxu1 }
 0x4a0   :  { %v4310_v60 = vpop.f32.mrf.mxu0  ;;  %v4318_v45 = vpop.f32.mrf.mxu1 }
 0x4ad   :  { %v3121_v47 = vpop.f32.mrf.mxu0  ;;  %v3164_v50 = vpop.f32.mrf.mxu1 }
 0x4ae   :  { %v4061_v43 = vpack.c.bf16 %v3121_v47, %v3121_v47  ;;  %v4062_v8 = vpack.c.bf16 %v3164_v50, %v3164_v50 }
 0x4af   :  { %v4325_v54 = vpop.f32.mrf.mxu0  ;;  %v4333_v15 = vpop.f32.mrf.mxu1 }
 0x4b0   :  { %3753 = vst.msk [vmem:[#allocation2 + $0x8] sm:$0xf] %vm3750_vm7, %v4061_v43  ;;  %3754 = vst.msk [vmem:[#allocation2 + $0xc] sm:$0xf] %vm3750_vm7, %v4062_v8 }
 0x4b1   :  { %v3124_v16 = vpop.f32.mrf.mxu0  ;;  %v3167_v13 = vpop.f32.mrf.mxu1 }
 0x4b3   :  { %v4326_v42 = vpop.f32.mrf.mxu0  ;;  %v4334_v7 = vpop.f32.mrf.mxu1 }
 0x4b8   :  { %v3207_v27 = vpop.f32.mrf.mxu0  ;;  %v3250_v62 = vpop.f32.mrf.mxu1 }
 0x4b9   :  { %v4063_v17 = vpack.c.bf16 %v3207_v27, %v3207_v27  ;;  %v4064_v56 = vpack.c.bf16 %v3250_v62, %v3250_v62 }
 0x4ba   :  { %v4341_v51 = vpop.f32.mrf.mxu0  ;;  %v4349_v19 = vpop.f32.mrf.mxu1 }
 0x4bb   :  { %3755 = vst.msk [vmem:[#allocation2 + $0x10] sm:$0xf] %vm3750_vm7, %v4063_v17  ;;  %3756 = vst.msk [vmem:[#allocation2 + $0x14] sm:$0xf] %vm3750_vm7, %v4064_v56 }
 0x4bc   :  { %v3210_v33 = vpop.f32.mrf.mxu0  ;;  %v3253_v20 = vpop.f32.mrf.mxu1 }
 0x4be   :  { %v4342_v24 = vpop.f32.mrf.mxu0  ;;  %v4350_v3 = vpop.f32.mrf.mxu1 }
 0x4e1   :  { %v3293_v55 = vpop.f32.mrf.mxu0  ;;  %v3336_v53 = vpop.f32.mrf.mxu1 }
 0x4e2   :  { %v4065_v49 = vpack.c.bf16 %v3293_v55, %v3293_v55  ;;  %v4066_v2 = vpack.c.bf16 %v3336_v53, %v3336_v53 }
 0x4e3   :  { %v4357_v52 = vpop.f32.mrf.mxu0  ;;  %v4365_v46 = vpop.f32.mrf.mxu1 }
 0x4e4   :  { %3757 = vst.msk [vmem:[#allocation2 + $0x18] sm:$0xf] %vm3750_vm7, %v4065_v49  ;;  %3758 = vst.msk [vmem:[#allocation2 + $0x1c] sm:$0xf] %vm3750_vm7, %v4066_v2 }
 0x4e5   :  { %v3296_v22 = vpop.f32.mrf.mxu0  ;;  %v3339_v39 = vpop.f32.mrf.mxu1 }
 0x4e7   :  { %v4358_v29 = vpop.f32.mrf.mxu0  ;;  %v4366_v59 = vpop.f32.mrf.mxu1 }
 0x4f1   :  { %v3379_v18 = vpop.f32.mrf.mxu0  ;;  %v3422_v25 = vpop.f32.mrf.mxu1 }
 0x4f2   :  { %v4067_v61 = vpack.c.bf16 %v3379_v18, %v3379_v18  ;;  %v4068_v58 = vpack.c.bf16 %v3422_v25, %v3422_v25 }
 0x4f3   :  { %v4373_v26 = vpop.f32.mrf.mxu0  ;;  %v4381_v5 = vpop.f32.mrf.mxu1 }
 0x4f4   :  { %3759 = vst.msk [vmem:[#allocation2 + $0x20] sm:$0xf] %vm3750_vm7, %v4067_v61  ;;  %3760 = vst.msk [vmem:[#allocation2 + $0x24] sm:$0xf] %vm3750_vm7, %v4068_v58 }
 0x4f5   :  { %v3382_v48 = vpop.f32.mrf.mxu0  ;;  %v3425_v14 = vpop.f32.mrf.mxu1 }
 0x4f7   :  { %v4374_v4 = vpop.f32.mrf.mxu0  ;;  %v4382_v57 = vpop.f32.mrf.mxu1 }
 0x501   :  { %v3465_v40 = vpop.f32.mrf.mxu0  ;;  %v3508_v9 = vpop.f32.mrf.mxu1 }
 0x502   :  { %v4069_v41 = vpack.c.bf16 %v3465_v40, %v3465_v40  ;;  %v4070_v28 = vpack.c.bf16 %v3508_v9, %v3508_v9 }
 0x503   :  { %v4389_v6 = vpop.f32.mrf.mxu0  ;;  %v4397_v11 = vpop.f32.mrf.mxu1 }
 0x504   :  { %3761 = vst.msk [vmem:[#allocation2 + $0x28] sm:$0xf] %vm3750_vm7, %v4069_v41  ;;  %3762 = vst.msk [vmem:[#allocation2 + $0x2c] sm:$0xf] %vm3750_vm7, %v4070_v28 }
 0x505   :  { %v3468_v32 = vpop.f32.mrf.mxu0  ;;  %v3511_v30 = vpop.f32.mrf.mxu1 }
 0x507   :  { %v4390_v44 = vpop.f32.mrf.mxu0  ;;  %v4398_v12 = vpop.f32.mrf.mxu1 }
 0x512   :  { %v3551_v31 = vpop.f32.mrf.mxu0  ;;  %v3594_v38 = vpop.f32.mrf.mxu1 }
 0x513   :  { %v4071_v0 = vpack.c.bf16 %v3551_v31, %v3551_v31  ;;  %v4072_v1 = vpack.c.bf16 %v3594_v38, %v3594_v38 }
 0x514   :  { %v4405_v10 = vpop.f32.mrf.mxu0  ;;  %v4413_v37 = vpop.f32.mrf.mxu1 }
 0x515   :  { %3763 = vst.msk [vmem:[#allocation2 + $0x30] sm:$0xf] %vm3750_vm7, %v4071_v0  ;;  %3764 = vst.msk [vmem:[#allocation2 + $0x34] sm:$0xf] %vm3750_vm7, %v4072_v1 }
 0x516   :  { %v3554_v36 = vpop.f32.mrf.mxu0  ;;  %v3597_v23 = vpop.f32.mrf.mxu1 }
 0x518   :  { %v4406_v34 = vpop.f32.mrf.mxu0  ;;  %v4414_v35 = vpop.f32.mrf.mxu1 }
 0x51f   :  { %v3637_v21 = vpop.f32.mrf.mxu0  ;;  %v3680_v63 = vpop.f32.mrf.mxu1 }
 0x520   :  { %v4073_v60 = vpack.c.bf16 %v3637_v21, %v3637_v21  ;;  %v4074_v45 = vpack.c.bf16 %v3680_v63, %v3680_v63 }
 0x521   :  { %v4421_v47 = vpop.f32.mrf.mxu0  ;;  %v4429_v50 = vpop.f32.mrf.mxu1 }
 0x522   :  { %3765 = vst.msk [vmem:[#allocation2 + $0x38] sm:$0xf] %vm3750_vm7, %v4073_v60  ;;  %3766 = vst.msk [vmem:[#allocation2 + $0x3c] sm:$0xf] %vm3750_vm7, %v4074_v45 }
 0x523   :  { %v3640_v43 = vpop.f32.mrf.mxu0  ;;  %v3683_v8 = vpop.f32.mrf.mxu1 }
 0x524   :  { %4879 = shalt.err (!%p4876_p4)
}
 0x525   :  { %s4898_s14 = smov 4   ;;  %v4422_v54 = vpop.f32.mrf.mxu0  ;;  %v4430_v15 = vpop.f32.mrf.mxu1 }
 0x526   :  { %3778 = dma.vmem_to_hbm [thread:$0]  %s3773_s12, 1024, %s6560_s2, [#allocation3], %s4891_s0, %s4891_s0, %s4898_s14  }
 0x527   :  { %4888 = dma.done.wait [#allocation3], 1024  }
 0x528   :  { %4889 = vsyncadd [#allocation3], 4294966272 }
 0x529   :  { %3782 = vsyncpa [#allocation3], 1 }

</bundles_post_ra>
